<compile_context>
chip_gen: v5e
topology: v5e:2x2
jax: 0.10.0
libtpu: 0.0.40
codegen_flags: <defaults>
</compile_context>

<pallas_src>
import math

import jax
import jax.numpy as jnp
from jax import lax
from jax.experimental import pallas as pl
from jax.experimental.pallas import tpu as pltpu

LN_EPS = 1e-12

# Default matmul tiles (clipped / aligned per call).  With f32 operands and
# double-buffering this working set stays well below the 32 MiB scoped-VMEM
# default and below v7x's 64 MiB physical VMEM.
TILE_M, TILE_N, TILE_K = 256, 512, 512


def _pick_tile(dim, desired, align):
    """Largest tile <= desired that divides `dim` and is a multiple of `align`,
    else the full dim (full-dim blocks always satisfy the (8,128) BlockSpec rule)."""
    if dim <= desired:
        return dim
    t = (min(desired, dim) // align) * align
    while t >= align:
        if dim % t == 0:
            return t
        t -= align
    return dim


# --------------------------- fused tiled matmul ----------------------------- #

def _matmul_fused(x, w, b, *, activation=None, residual=None, ln_g=None, ln_b=None):
    """y = act(x @ w + b) [+ residual] [-> LayerNorm(.) * g + b_ln].

    Tiled over (M, N, K) with an f32 VMEM accumulator; bias / GELU / residual /
    LayerNorm are applied in the epilogue on the last K step (epilogue fusion).
    When LayerNorm is requested the N axis is kept un-tiled (LN reduces over it).
    """
    M, K = x.shape
    N = w.shape[1]
    has_res = residual is not None
    has_ln = ln_g is not None

    tm = _pick_tile(M, TILE_M, 8)
    tk = _pick_tile(K, TILE_K, 128)
    tn = N if has_ln else _pick_tile(N, TILE_N, 128)

    grid = (M // tm, N // tn, K // tk)

    def kernel(*args):
        idx = 0
        x_ref = args[idx]; idx += 1
        w_ref = args[idx]; idx += 1
        b_ref = args[idx]; idx += 1
        r_ref = None
        if has_res:
            r_ref = args[idx]; idx += 1
        g_ref = bt_ref = None
        if has_ln:
            g_ref = args[idx]; idx += 1
            bt_ref = args[idx]; idx += 1
        o_ref = args[idx]; idx += 1
        acc_ref = args[idx]

        k = pl.program_id(2)

        @pl.when(k == 0)
        def _():
            acc_ref[...] = jnp.zeros_like(acc_ref)

        acc_ref[...] += jnp.dot(x_ref[...], w_ref[...],
                                preferred_element_type=jnp.float32)

        @pl.when(k == pl.num_programs(2) - 1)
        def _():
            y = acc_ref[...] + b_ref[...]
            if activation == "gelu":
                # transformers' exact erf-based GELU (kept for bit-faithful semantics).
                y = 0.5 * y * (1.0 + lax.erf(y * jnp.float32(1.0 / math.sqrt(2.0))))
            if has_res:
                y = y + r_ref[...]
            if has_ln:
                mu = jnp.mean(y, axis=-1, keepdims=True)
                var = jnp.mean(jnp.square(y - mu), axis=-1, keepdims=True)
                y = (y - mu) * lax.rsqrt(var + LN_EPS)
                y = y * g_ref[...] + bt_ref[...]
            o_ref[...] = y.astype(o_ref.dtype)

    in_specs = [
        pl.BlockSpec((tm, tk), lambda i, j, k: (i, k)),
        pl.BlockSpec((tk, tn), lambda i, j, k: (k, j)),
        pl.BlockSpec((1, tn), lambda i, j, k: (0, j)),
    ]
    inputs = [x, w, b.reshape(1, N)]
    if has_res:
        in_specs.append(pl.BlockSpec((tm, tn), lambda i, j, k: (i, j)))
        inputs.append(residual)
    if has_ln:
        in_specs.append(pl.BlockSpec((1, tn), lambda i, j, k: (0, j)))
        in_specs.append(pl.BlockSpec((1, tn), lambda i, j, k: (0, j)))
        inputs.append(ln_g.reshape(1, N))
        inputs.append(ln_b.reshape(1, N))

    return pl.pallas_call(
        kernel,
        out_shape=jax.ShapeDtypeStruct((M, N), x.dtype),
        grid=grid,
        in_specs=in_specs,
        out_specs=pl.BlockSpec((tm, tn), lambda i, j, k: (i, j)),
        scratch_shapes=[pltpu.VMEM((tm, tn), jnp.float32)],
        compiler_params=pltpu.CompilerParams(
            dimension_semantics=("parallel", "parallel", "arbitrary")),
    )(*inputs)


# ----------------------------- attention core ------------------------------- #

def _attn_heads(q, k, v, num_heads, d, scale):
    """Per-head softmax(q k^T / sqrt(d)) v on already-loaded (S, H)-layout values."""
    ctxs = []
    for h in range(num_heads):
        lo, hi = h * d, (h + 1) * d
        qh = q[:, lo:hi] * jnp.float32(scale)          # scale the small operand
        kh = k[:, lo:hi]
        vh = v[:, lo:hi]
        # contract on d of both operands (no explicit K transpose).
        s = lax.dot_general(qh, kh, (((1,), (1,)), ((), ())),
                            preferred_element_type=jnp.float32)
        m = jnp.max(s, axis=-1, keepdims=True)
        p = jnp.exp(s - m)
        denom = jnp.sum(p, axis=-1, keepdims=True)
        p = p * pl.reciprocal(denom, approx=True)      # divide on the EUP slot
        ctxs.append(jnp.dot(p, vh, preferred_element_type=jnp.float32))
    # single lane-dense (Sq, H) result.
    return jnp.concatenate(ctxs, axis=-1)


def _mha_packed(q_pack, kv_pack, *, B, Sq, Skv, H, num_heads, self_attention):
    """Multi-head attention on packed projections.

    self-attention : q_pack = (B*Sq, 3H) fused [Q|K|V],  kv_pack unused.
    cross-attention: q_pack = (B*Sq, H) queries, kv_pack = (B*Skv, 2H) fused [K|V].

    The packed slabs go straight from the projection matmul into this kernel; the
    per-stream / per-head slicing happens in VMEM, so no host-side slice copies or
    (0,2,1,3) relayouts are materialised in HBM.
    """
    d = H // num_heads
    scale = 1.0 / math.sqrt(d)

    # TODO(synk): for long encoder sequences convert to a KV-tiled online-softmax
    # (flash) form instead of holding the full (Sq, Skv) score matrix per head.
    if self_attention:
        qkv3 = q_pack.reshape(B, Sq, 3 * H)

        def kernel(qkv_ref, o_ref):
            qkv = qkv_ref[0]                 # (Sq, 3H)
            q = qkv[:, :H]
            k = qkv[:, H:2 * H]
            v = qkv[:, 2 * H:]
            o_ref[0] = _attn_heads(q, k, v, num_heads, d, scale).astype(o_ref.dtype)

        out = pl.pallas_call(
            kernel,
            out_shape=jax.ShapeDtypeStruct((B, Sq, H), q_pack.dtype),
            grid=(B,),
            in_specs=[pl.BlockSpec((1, Sq, 3 * H), lambda b: (b, 0, 0))],
            out_specs=pl.BlockSpec((1, Sq, H), lambda b: (b, 0, 0)),
            compiler_params=pltpu.CompilerParams(dimension_semantics=("parallel",)),
        )(qkv3)
    else:
        q3 = q_pack.reshape(B, Sq, H)
        kv3 = kv_pack.reshape(B, Skv, 2 * H)

        def kernel(q_ref, kv_ref, o_ref):
            q = q_ref[0]                     # (Sq, H)
            kv = kv_ref[0]                   # (Skv, 2H)
            k = kv[:, :H]
            v = kv[:, H:]
            o_ref[0] = _attn_heads(q, k, v, num_heads, d, scale).astype(o_ref.dtype)

        out = pl.pallas_call(
            kernel,
            out_shape=jax.ShapeDtypeStruct((B, Sq, H), q_pack.dtype),
            grid=(B,),
            in_specs=[pl.BlockSpec((1, Sq, H), lambda b: (b, 0, 0)),
                      pl.BlockSpec((1, Skv, 2 * H), lambda b: (b, 0, 0))],
            out_specs=pl.BlockSpec((1, Sq, H), lambda b: (b, 0, 0)),
            compiler_params=pltpu.CompilerParams(dimension_semantics=("parallel",)),
        )(q3, kv3)

    return out.reshape(B * Sq, H)


# ----------------------------- module forward ------------------------------- #

def bert_attention(hidden, kv_source, p, num_heads, *, self_attention):
    """BertAttention = multi-head (self or cross) attention + fused output dense+add+LN."""
    B, Sq, H = hidden.shape
    Skv = kv_source.shape[1]
    x2 = hidden.reshape(B * Sq, H)

    if self_attention:
        # fused QKV projection: x @ [Wq | Wk | Wv] -> packed (B*Sq, 3H), consumed as-is.
        w_qkv = jnp.concatenate([p["wq"], p["wk"], p["wv"]], axis=1)
        b_qkv = jnp.concatenate([p["bq"], p["bk"], p["bv"]], axis=0)
        qkv = _matmul_fused(x2, w_qkv, b_qkv)
        ctx2 = _mha_packed(qkv, None, B=B, Sq=Sq, Skv=Skv, H=H,
                           num_heads=num_heads, self_attention=True)
    else:
        # queries from decoder states, fused KV projection from encoder states.
        kv2 = kv_source.reshape(B * Skv, H)
        q2 = _matmul_fused(x2, p["wq"], p["bq"])
        w_kv = jnp.concatenate([p["wk"], p["wv"]], axis=1)
        b_kv = jnp.concatenate([p["bk"], p["bv"]], axis=0)
        kvp = _matmul_fused(kv2, w_kv, b_kv)
        ctx2 = _mha_packed(q2, kvp, B=B, Sq=Sq, Skv=Skv, H=H,
                           num_heads=num_heads, self_attention=False)

    # output projection with fused (residual add + LayerNorm) epilogue.
    out2 = _matmul_fused(ctx2, p["wo"], p["bo"],
                         residual=x2, ln_g=p["ln_g"], ln_b=p["ln_b"])
    return out2.reshape(B, Sq, H)


def decoder_layer_forward(hidden_states, encoder_hidden_states, params, num_heads):
    # self-attention block
    attn_out = bert_attention(hidden_states, hidden_states,
                              params["self_attn"], num_heads, self_attention=True)
    # cross-attention block (queries from attn_out, keys/values from encoder states)
    cross_out = bert_attention(attn_out, encoder_hidden_states,
                               params["cross_attn"], num_heads, self_attention=False)
    # intermediate (Linear + GELU fused) and output (Linear + residual + LayerNorm fused)
    B, S, H = cross_out.shape
    x2 = cross_out.reshape(B * S, H)
    inter = _matmul_fused(x2, params["wi"], params["bi"], activation="gelu")
    out2 = _matmul_fused(inter, params["wo2"], params["bo2"],
                         residual=x2, ln_g=params["out_ln_g"], ln_b=params["out_ln_b"])
    layer_output = out2.reshape(B, S, H)
    # TODO(synk): attention-prob side outputs (outputs[1:]) are empty here since
    # output_attentions is not enabled in the reference config path.
    return (layer_output,)


# ----------------------------- parameter init ------------------------------- #

def _dense(key, fin, fout):
    return jax.random.normal(key, (fin, fout), jnp.float32) * 0.02, jnp.zeros((fout,), jnp.float32)


def init_attention_params(key, H):
    ks = jax.random.split(key, 4)
    wq, bq = _dense(ks[0], H, H)
    wk, bk = _dense(ks[1], H, H)
    wv, bv = _dense(ks[2], H, H)
    wo, bo = _dense(ks[3], H, H)
    return dict(wq=wq, bq=bq, wk=wk, bk=bk, wv=wv, bv=bv, wo=wo, bo=bo,
                ln_g=jnp.ones((H,), jnp.float32), ln_b=jnp.zeros((H,), jnp.float32))


def init_params(key, H, I):
    k1, k2, k3, k4 = jax.random.split(key, 4)
    wi, bi = _dense(k3, H, I)
    wo2, bo2 = _dense(k4, I, H)
    return dict(
        self_attn=init_attention_params(k1, H),
        cross_attn=init_attention_params(k2, H),
        wi=wi, bi=bi, wo2=wo2, bo2=bo2,
        out_ln_g=jnp.ones((H,), jnp.float32),
        out_ln_b=jnp.zeros((H,), jnp.float32),
    )


# ---------------------------------- main ------------------------------------ #

if __name__ == "__main__":
    B, S, S_ENC, H, NUM_HEADS, INTER = 2, 8, 8, 32, 4, 64

    key = jax.random.PRNGKey(0)
    k_h, k_e, k_p = jax.random.split(key, 3)
    hidden_states = jax.random.normal(k_h, (B, S, H), jnp.float32)
    encoder_hidden_states = jax.random.normal(k_e, (B, S_ENC, H), jnp.float32)
    params = init_params(k_p, H, INTER)

    fwd = jax.jit(lambda h, e, p: decoder_layer_forward(h, e, p, NUM_HEADS))
    outputs = fwd(hidden_states, encoder_hidden_states, params)
    layer_output = jax.block_until_ready(outputs[0])

    assert layer_output.shape == (B, S, H)
    assert bool(jnp.all(jnp.isfinite(layer_output)))
    print("KERNEL_OK")
</pallas_src>

<mosaic_0001>
module attributes {stable_mosaic.version = 11 : i64} {
  func.func @kernel(%arg0: i32, %arg1: i32, %arg2: i32, %arg3: memref<16x32xf32, #tpu.memory_space<vmem>>, %arg4: memref<32x64xf32, #tpu.memory_space<vmem>>, %arg5: memref<1x64xf32, #tpu.memory_space<vmem>>, %arg6: memref<16x64xf32, #tpu.memory_space<vmem>>, %arg7: memref<16x64xf32, #tpu.memory_space<vmem>>) attributes {dimension_semantics = [#tpu.dimension_semantics<parallel>, #tpu.dimension_semantics<parallel>, #tpu.dimension_semantics<arbitrary>], iteration_bounds = array<i64: 1, 1, 1>, scalar_prefetch = 0 : i64, scratch_operands = 1 : i64, tpu.core_type = #tpu.core_type<tc>, window_params = [{transform_indices = @transform_0, window_bounds = array<i64: 16, 32>}, {transform_indices = @transform_1, window_bounds = array<i64: 32, 64>}, {transform_indices = @transform_2, window_bounds = array<i64: 1, 64>}, {transform_indices = @transform_3, window_bounds = array<i64: 16, 64>}]} {
    %c0_i32 = arith.constant 0 : i32
    %0 = arith.cmpi eq, %arg2, %c0_i32 : i32
    %1 = arith.extui %0 : i1 to i32
    %c0_i32_0 = arith.constant 0 : i32
    %2 = arith.cmpi ne, %1, %c0_i32_0 : i32
    scf.if %2 {
      %cst_10 = arith.constant 0.000000e+00 : f32
      %12 = vector.broadcast %cst_10 : f32 to vector<16x64xf32>
      %c0_11 = arith.constant 0 : index
      %c0_12 = arith.constant 0 : index
      %13 = vector.load %arg7[%c0_11, %c0_12] : memref<16x64xf32, #tpu.memory_space<vmem>>, vector<16x64xf32>
      tpu.vector_store %arg7[%c0_11, %c0_12], %12 {strides = array<i32>} : memref<16x64xf32, #tpu.memory_space<vmem>>, vector<16x64xf32>,
    } else {
    }
    %c0 = arith.constant 0 : index
    %c0_1 = arith.constant 0 : index
    %3 = vector.load %arg7[%c0, %c0_1] : memref<16x64xf32, #tpu.memory_space<vmem>>, vector<16x64xf32>
    %c0_2 = arith.constant 0 : index
    %c0_3 = arith.constant 0 : index
    %4 = vector.load %arg3[%c0_2, %c0_3] : memref<16x32xf32, #tpu.memory_space<vmem>>, vector<16x32xf32>
    %c0_4 = arith.constant 0 : index
    %c0_5 = arith.constant 0 : index
    %5 = vector.load %arg4[%c0_4, %c0_5] : memref<32x64xf32, #tpu.memory_space<vmem>>, vector<32x64xf32>
    %cst = arith.constant dense<0.000000e+00> : vector<16x64xf32>
    %6 = tpu.matmul %4, %5, %cst {dimension_numbers = #tpu.dot_dimension_numbers<[1], [0], [0], [1], [0, 0, 1, 1], [], []>} : vector<16x32xf32>, vector<32x64xf32>, vector<16x64xf32> -> vector<16x64xf32>
    %7 = arith.addf %3, %6 : vector<16x64xf32>
    %c0_6 = arith.constant 0 : index
    %c0_7 = arith.constant 0 : index
    %8 = vector.load %arg7[%c0_6, %c0_7] : memref<16x64xf32, #tpu.memory_space<vmem>>, vector<16x64xf32>
    tpu.vector_store %arg7[%c0_6, %c0_7], %7 {strides = array<i32>} : memref<16x64xf32, #tpu.memory_space<vmem>>, vector<16x64xf32>,
    %c0_i32_8 = arith.constant 0 : i32
    %9 = arith.cmpi eq, %arg2, %c0_i32_8 : i32
    %10 = arith.extui %9 : i1 to i32
    %c0_i32_9 = arith.constant 0 : i32
    %11 = arith.cmpi ne, %10, %c0_i32_9 : i32
    scf.if %11 {
      %c0_10 = arith.constant 0 : index
      %c0_11 = arith.constant 0 : index
      %12 = vector.load %arg7[%c0_10, %c0_11] : memref<16x64xf32, #tpu.memory_space<vmem>>, vector<16x64xf32>
      %c0_12 = arith.constant 0 : index
      %c0_13 = arith.constant 0 : index
      %13 = vector.load %arg5[%c0_12, %c0_13] : memref<1x64xf32, #tpu.memory_space<vmem>>, vector<1x64xf32>
      %14 = vector.broadcast %13 : vector<1x64xf32> to vector<16x64xf32>
      %15 = arith.addf %12, %14 : vector<16x64xf32>
      %c0_14 = arith.constant 0 : index
      %c0_15 = arith.constant 0 : index
      %16 = vector.load %arg6[%c0_14, %c0_15] : memref<16x64xf32, #tpu.memory_space<vmem>>, vector<16x64xf32>
      tpu.vector_store %arg6[%c0_14, %c0_15], %15 {strides = array<i32>} : memref<16x64xf32, #tpu.memory_space<vmem>>, vector<16x64xf32>,
    } else {
    }
    return
  }
  func.func @transform_0(%arg0: i32, %arg1: i32, %arg2: i32) -> (i32, i32) {
    %c0_i32 = arith.constant 0 : i32
    return %arg0, %arg2 : i32, i32
  }
  func.func @transform_1(%arg0: i32, %arg1: i32, %arg2: i32) -> (i32, i32) {
    %c0_i32 = arith.constant 0 : i32
    return %arg2, %arg1 : i32, i32
  }
  func.func @transform_2(%arg0: i32, %arg1: i32, %arg2: i32) -> (i32, i32) {
    %c0_i32 = arith.constant 0 : i32
    %c0_i32_0 = arith.constant 0 : i32
    return %c0_i32, %arg1 : i32, i32
  }
  func.func @transform_3(%arg0: i32, %arg1: i32, %arg2: i32) -> (i32, i32) {
    %c0_i32 = arith.constant 0 : i32
    return %arg0, %arg1 : i32, i32
  }
}

module attributes {stable_mosaic.version = 11 : i64} {
  func.func @kernel(%arg0: i32, %arg1: i32, %arg2: i32, %arg3: memref<16x32xf32, #tpu.memory_space<vmem>>, %arg4: memref<32x96xf32, #tpu.memory_space<vmem>>, %arg5: memref<1x96xf32, #tpu.memory_space<vmem>>, %arg6: memref<16x96xf32, #tpu.memory_space<vmem>>, %arg7: memref<16x96xf32, #tpu.memory_space<vmem>>) attributes {dimension_semantics = [#tpu.dimension_semantics<parallel>, #tpu.dimension_semantics<parallel>, #tpu.dimension_semantics<arbitrary>], iteration_bounds = array<i64: 1, 1, 1>, scalar_prefetch = 0 : i64, scratch_operands = 1 : i64, tpu.core_type = #tpu.core_type<tc>, window_params = [{transform_indices = @transform_0, window_bounds = array<i64: 16, 32>}, {transform_indices = @transform_1, window_bounds = array<i64: 32, 96>}, {transform_indices = @transform_2, window_bounds = array<i64: 1, 96>}, {transform_indices = @transform_3, window_bounds = array<i64: 16, 96>}]} {
    %c0_i32 = arith.constant 0 : i32
    %0 = arith.cmpi eq, %arg2, %c0_i32 : i32
    %1 = arith.extui %0 : i1 to i32
    %c0_i32_0 = arith.constant 0 : i32
    %2 = arith.cmpi ne, %1, %c0_i32_0 : i32
    scf.if %2 {
      %cst_10 = arith.constant 0.000000e+00 : f32
      %12 = vector.broadcast %cst_10 : f32 to vector<16x96xf32>
      %c0_11 = arith.constant 0 : index
      %c0_12 = arith.constant 0 : index
      %13 = vector.load %arg7[%c0_11, %c0_12] : memref<16x96xf32, #tpu.memory_space<vmem>>, vector<16x96xf32>
      tpu.vector_store %arg7[%c0_11, %c0_12], %12 {strides = array<i32>} : memref<16x96xf32, #tpu.memory_space<vmem>>, vector<16x96xf32>,
    } else {
    }
    %c0 = arith.constant 0 : index
    %c0_1 = arith.constant 0 : index
    %3 = vector.load %arg7[%c0, %c0_1] : memref<16x96xf32, #tpu.memory_space<vmem>>, vector<16x96xf32>
    %c0_2 = arith.constant 0 : index
    %c0_3 = arith.constant 0 : index
    %4 = vector.load %arg3[%c0_2, %c0_3] : memref<16x32xf32, #tpu.memory_space<vmem>>, vector<16x32xf32>
    %c0_4 = arith.constant 0 : index
    %c0_5 = arith.constant 0 : index
    %5 = vector.load %arg4[%c0_4, %c0_5] : memref<32x96xf32, #tpu.memory_space<vmem>>, vector<32x96xf32>
    %cst = arith.constant dense<0.000000e+00> : vector<16x96xf32>
    %6 = tpu.matmul %4, %5, %cst {dimension_numbers = #tpu.dot_dimension_numbers<[1], [0], [0], [1], [0, 0, 1, 1], [], []>} : vector<16x32xf32>, vector<32x96xf32>, vector<16x96xf32> -> vector<16x96xf32>
    %7 = arith.addf %3, %6 : vector<16x96xf32>
    %c0_6 = arith.constant 0 : index
    %c0_7 = arith.constant 0 : index
    %8 = vector.load %arg7[%c0_6, %c0_7] : memref<16x96xf32, #tpu.memory_space<vmem>>, vector<16x96xf32>
    tpu.vector_store %arg7[%c0_6, %c0_7], %7 {strides = array<i32>} : memref<16x96xf32, #tpu.memory_space<vmem>>, vector<16x96xf32>,
    %c0_i32_8 = arith.constant 0 : i32
    %9 = arith.cmpi eq, %arg2, %c0_i32_8 : i32
    %10 = arith.extui %9 : i1 to i32
    %c0_i32_9 = arith.constant 0 : i32
    %11 = arith.cmpi ne, %10, %c0_i32_9 : i32
    scf.if %11 {
      %c0_10 = arith.constant 0 : index
      %c0_11 = arith.constant 0 : index
      %12 = vector.load %arg7[%c0_10, %c0_11] : memref<16x96xf32, #tpu.memory_space<vmem>>, vector<16x96xf32>
      %c0_12 = arith.constant 0 : index
      %c0_13 = arith.constant 0 : index
      %13 = vector.load %arg5[%c0_12, %c0_13] : memref<1x96xf32, #tpu.memory_space<vmem>>, vector<1x96xf32>
      %14 = vector.broadcast %13 : vector<1x96xf32> to vector<16x96xf32>
      %15 = arith.addf %12, %14 : vector<16x96xf32>
      %c0_14 = arith.constant 0 : index
      %c0_15 = arith.constant 0 : index
      %16 = vector.load %arg6[%c0_14, %c0_15] : memref<16x96xf32, #tpu.memory_space<vmem>>, vector<16x96xf32>
      tpu.vector_store %arg6[%c0_14, %c0_15], %15 {strides = array<i32>} : memref<16x96xf32, #tpu.memory_space<vmem>>, vector<16x96xf32>,
    } else {
    }
    return
  }
  func.func @transform_0(%arg0: i32, %arg1: i32, %arg2: i32) -> (i32, i32) {
    %c0_i32 = arith.constant 0 : i32
    return %arg0, %arg2 : i32, i32
  }
  func.func @transform_1(%arg0: i32, %arg1: i32, %arg2: i32) -> (i32, i32) {
    %c0_i32 = arith.constant 0 : i32
    return %arg2, %arg1 : i32, i32
  }
  func.func @transform_2(%arg0: i32, %arg1: i32, %arg2: i32) -> (i32, i32) {
    %c0_i32 = arith.constant 0 : i32
    %c0_i32_0 = arith.constant 0 : i32
    return %c0_i32, %arg1 : i32, i32
  }
  func.func @transform_3(%arg0: i32, %arg1: i32, %arg2: i32) -> (i32, i32) {
    %c0_i32 = arith.constant 0 : i32
    return %arg0, %arg1 : i32, i32
  }
}

module attributes {stable_mosaic.version = 11 : i64} {
  func.func @kernel(%arg0: i32, %arg1: memref<1x8x96xf32, #tpu.memory_space<vmem>>, %arg2: memref<1x8x32xf32, #tpu.memory_space<vmem>>) attributes {dimension_semantics = [#tpu.dimension_semantics<parallel>], iteration_bounds = array<i64: 2>, scalar_prefetch = 0 : i64, scratch_operands = 0 : i64, tpu.core_type = #tpu.core_type<tc>, window_params = [{transform_indices = @transform_0, window_bounds = array<i64: 1, 8, 96>}, {transform_indices = @transform_1, window_bounds = array<i64: 1, 8, 32>}]} {
    %c0 = arith.constant 0 : index
    %c0_0 = arith.constant 0 : index
    %c0_1 = arith.constant 0 : index
    %0 = vector.load %arg1[%c0, %c0_0, %c0_1] : memref<1x8x96xf32, #tpu.memory_space<vmem>>, vector<1x8x96xf32>
    %1 = vector.shape_cast %0 : vector<1x8x96xf32> to vector<8x96xf32>
    %2 = vector.extract_strided_slice %1 {offsets = [0, 0], sizes = [8, 32], strides = [1, 1]} : vector<8x96xf32> to vector<8x32xf32>
    %3 = vector.extract_strided_slice %1 {offsets = [0, 32], sizes = [8, 32], strides = [1, 1]} : vector<8x96xf32> to vector<8x32xf32>
    %4 = vector.extract_strided_slice %1 {offsets = [0, 64], sizes = [8, 32], strides = [1, 1]} : vector<8x96xf32> to vector<8x32xf32>
    %5 = vector.extract_strided_slice %2 {offsets = [0, 0], sizes = [8, 8], strides = [1, 1]} : vector<8x32xf32> to vector<8x8xf32>
    %cst = arith.constant 0.353553385 : f32
    %6 = vector.broadcast %cst : f32 to vector<8x8xf32>
    %7 = arith.mulf %5, %6 : vector<8x8xf32>
    %8 = vector.extract_strided_slice %3 {offsets = [0, 0], sizes = [8, 8], strides = [1, 1]} : vector<8x32xf32> to vector<8x8xf32>
    %9 = vector.extract_strided_slice %4 {offsets = [0, 0], sizes = [8, 8], strides = [1, 1]} : vector<8x32xf32> to vector<8x8xf32>
    %cst_2 = arith.constant dense<0.000000e+00> : vector<8x8xf32>
    %10 = tpu.matmul %7, %8, %cst_2 {dimension_numbers = #tpu.dot_dimension_numbers<[1], [1], [0], [0], [0, 0, 1, 0], [], []>} : vector<8x8xf32>, vector<8x8xf32>, vector<8x8xf32> -> vector<8x8xf32>
    %cst_3 = arith.constant dense<0xFF800000> : vector<8xf32>
    %11 = vector.multi_reduction <maximumf>, %10, %cst_3 [1] : vector<8x8xf32> to vector<8xf32>
    %12 = vector.shape_cast %11 : vector<8xf32> to vector<8x1xf32>
    %13 = vector.broadcast %12 : vector<8x1xf32> to vector<8x8xf32>
    %14 = arith.subf %10, %13 : vector<8x8xf32>
    %15 = math.exp %14 : vector<8x8xf32>
    %cst_4 = arith.constant dense<0.000000e+00> : vector<8xf32>
    %16 = vector.multi_reduction <add>, %15, %cst_4 [1] : vector<8x8xf32> to vector<8xf32>
    %17 = vector.shape_cast %16 : vector<8xf32> to vector<8x1xf32>
    %18 = tpu.reciprocal %17 {approx = true} : vector<8x1xf32> -> vector<8x1xf32>
    %19 = vector.broadcast %18 : vector<8x1xf32> to vector<8x8xf32>
    %20 = arith.mulf %15, %19 : vector<8x8xf32>
    %cst_5 = arith.constant dense<0.000000e+00> : vector<8x8xf32>
    %21 = tpu.matmul %20, %9, %cst_5 {dimension_numbers = #tpu.dot_dimension_numbers<[1], [0], [0], [1], [0, 0, 1, 1], [], []>} : vector<8x8xf32>, vector<8x8xf32>, vector<8x8xf32> -> vector<8x8xf32>
    %22 = vector.extract_strided_slice %2 {offsets = [0, 8], sizes = [8, 8], strides = [1, 1]} : vector<8x32xf32> to vector<8x8xf32>
    %cst_6 = arith.constant 0.353553385 : f32
    %23 = vector.broadcast %cst_6 : f32 to vector<8x8xf32>
    %24 = arith.mulf %22, %23 : vector<8x8xf32>
    %25 = vector.extract_strided_slice %3 {offsets = [0, 8], sizes = [8, 8], strides = [1, 1]} : vector<8x32xf32> to vector<8x8xf32>
    %26 = vector.extract_strided_slice %4 {offsets = [0, 8], sizes = [8, 8], strides = [1, 1]} : vector<8x32xf32> to vector<8x8xf32>
    %cst_7 = arith.constant dense<0.000000e+00> : vector<8x8xf32>
    %27 = tpu.matmul %24, %25, %cst_7 {dimension_numbers = #tpu.dot_dimension_numbers<[1], [1], [0], [0], [0, 0, 1, 0], [], []>} : vector<8x8xf32>, vector<8x8xf32>, vector<8x8xf32> -> vector<8x8xf32>
    %cst_8 = arith.constant dense<0xFF800000> : vector<8xf32>
    %28 = vector.multi_reduction <maximumf>, %27, %cst_8 [1] : vector<8x8xf32> to vector<8xf32>
    %29 = vector.shape_cast %28 : vector<8xf32> to vector<8x1xf32>
    %30 = vector.broadcast %29 : vector<8x1xf32> to vector<8x8xf32>
    %31 = arith.subf %27, %30 : vector<8x8xf32>
    %32 = math.exp %31 : vector<8x8xf32>
    %cst_9 = arith.constant dense<0.000000e+00> : vector<8xf32>
    %33 = vector.multi_reduction <add>, %32, %cst_9 [1] : vector<8x8xf32> to vector<8xf32>
    %34 = vector.shape_cast %33 : vector<8xf32> to vector<8x1xf32>
    %35 = tpu.reciprocal %34 {approx = true} : vector<8x1xf32> -> vector<8x1xf32>
    %36 = vector.broadcast %35 : vector<8x1xf32> to vector<8x8xf32>
    %37 = arith.mulf %32, %36 : vector<8x8xf32>
    %cst_10 = arith.constant dense<0.000000e+00> : vector<8x8xf32>
    %38 = tpu.matmul %37, %26, %cst_10 {dimension_numbers = #tpu.dot_dimension_numbers<[1], [0], [0], [1], [0, 0, 1, 1], [], []>} : vector<8x8xf32>, vector<8x8xf32>, vector<8x8xf32> -> vector<8x8xf32>
    %39 = vector.extract_strided_slice %2 {offsets = [0, 16], sizes = [8, 8], strides = [1, 1]} : vector<8x32xf32> to vector<8x8xf32>
    %cst_11 = arith.constant 0.353553385 : f32
    %40 = vector.broadcast %cst_11 : f32 to vector<8x8xf32>
    %41 = arith.mulf %39, %40 : vector<8x8xf32>
    %42 = vector.extract_strided_slice %3 {offsets = [0, 16], sizes = [8, 8], strides = [1, 1]} : vector<8x32xf32> to vector<8x8xf32>
    %43 = vector.extract_strided_slice %4 {offsets = [0, 16], sizes = [8, 8], strides = [1, 1]} : vector<8x32xf32> to vector<8x8xf32>
    %cst_12 = arith.constant dense<0.000000e+00> : vector<8x8xf32>
    %44 = tpu.matmul %41, %42, %cst_12 {dimension_numbers = #tpu.dot_dimension_numbers<[1], [1], [0], [0], [0, 0, 1, 0], [], []>} : vector<8x8xf32>, vector<8x8xf32>, vector<8x8xf32> -> vector<8x8xf32>
    %cst_13 = arith.constant dense<0xFF800000> : vector<8xf32>
    %45 = vector.multi_reduction <maximumf>, %44, %cst_13 [1] : vector<8x8xf32> to vector<8xf32>
    %46 = vector.shape_cast %45 : vector<8xf32> to vector<8x1xf32>
    %47 = vector.broadcast %46 : vector<8x1xf32> to vector<8x8xf32>
    %48 = arith.subf %44, %47 : vector<8x8xf32>
    %49 = math.exp %48 : vector<8x8xf32>
    %cst_14 = arith.constant dense<0.000000e+00> : vector<8xf32>
    %50 = vector.multi_reduction <add>, %49, %cst_14 [1] : vector<8x8xf32> to vector<8xf32>
    %51 = vector.shape_cast %50 : vector<8xf32> to vector<8x1xf32>
    %52 = tpu.reciprocal %51 {approx = true} : vector<8x1xf32> -> vector<8x1xf32>
    %53 = vector.broadcast %52 : vector<8x1xf32> to vector<8x8xf32>
    %54 = arith.mulf %49, %53 : vector<8x8xf32>
    %cst_15 = arith.constant dense<0.000000e+00> : vector<8x8xf32>
    %55 = tpu.matmul %54, %43, %cst_15 {dimension_numbers = #tpu.dot_dimension_numbers<[1], [0], [0], [1], [0, 0, 1, 1], [], []>} : vector<8x8xf32>, vector<8x8xf32>, vector<8x8xf32> -> vector<8x8xf32>
    %56 = vector.extract_strided_slice %2 {offsets = [0, 24], sizes = [8, 8], strides = [1, 1]} : vector<8x32xf32> to vector<8x8xf32>
    %cst_16 = arith.constant 0.353553385 : f32
    %57 = vector.broadcast %cst_16 : f32 to vector<8x8xf32>
    %58 = arith.mulf %56, %57 : vector<8x8xf32>
    %59 = vector.extract_strided_slice %3 {offsets = [0, 24], sizes = [8, 8], strides = [1, 1]} : vector<8x32xf32> to vector<8x8xf32>
    %60 = vector.extract_strided_slice %4 {offsets = [0, 24], sizes = [8, 8], strides = [1, 1]} : vector<8x32xf32> to vector<8x8xf32>
    %cst_17 = arith.constant dense<0.000000e+00> : vector<8x8xf32>
    %61 = tpu.matmul %58, %59, %cst_17 {dimension_numbers = #tpu.dot_dimension_numbers<[1], [1], [0], [0], [0, 0, 1, 0], [], []>} : vector<8x8xf32>, vector<8x8xf32>, vector<8x8xf32> -> vector<8x8xf32>
    %cst_18 = arith.constant dense<0xFF800000> : vector<8xf32>
    %62 = vector.multi_reduction <maximumf>, %61, %cst_18 [1] : vector<8x8xf32> to vector<8xf32>
    %63 = vector.shape_cast %62 : vector<8xf32> to vector<8x1xf32>
    %64 = vector.broadcast %63 : vector<8x1xf32> to vector<8x8xf32>
    %65 = arith.subf %61, %64 : vector<8x8xf32>
    %66 = math.exp %65 : vector<8x8xf32>
    %cst_19 = arith.constant dense<0.000000e+00> : vector<8xf32>
    %67 = vector.multi_reduction <add>, %66, %cst_19 [1] : vector<8x8xf32> to vector<8xf32>
    %68 = vector.shape_cast %67 : vector<8xf32> to vector<8x1xf32>
    %69 = tpu.reciprocal %68 {approx = true} : vector<8x1xf32> -> vector<8x1xf32>
    %70 = vector.broadcast %69 : vector<8x1xf32> to vector<8x8xf32>
    %71 = arith.mulf %66, %70 : vector<8x8xf32>
    %cst_20 = arith.constant dense<0.000000e+00> : vector<8x8xf32>
    %72 = tpu.matmul %71, %60, %cst_20 {dimension_numbers = #tpu.dot_dimension_numbers<[1], [0], [0], [1], [0, 0, 1, 1], [], []>} : vector<8x8xf32>, vector<8x8xf32>, vector<8x8xf32> -> vector<8x8xf32>
    %73 = tpu.concatenate %21, %38, %55, %72 in 1 : vector<8x8xf32>, vector<8x8xf32>, vector<8x8xf32>, vector<8x8xf32> -> vector<8x32xf32>
    %c0_21 = arith.constant 0 : index
    %c0_22 = arith.constant 0 : index
    %c0_23 = arith.constant 0 : index
    %74 = vector.load %arg2[%c0_21, %c0_22, %c0_23] : memref<1x8x32xf32, #tpu.memory_space<vmem>>, vector<1x8x32xf32>
    %75 = vector.shape_cast %74 : vector<1x8x32xf32> to vector<8x32xf32>
    %76 = vector.shape_cast %73 : vector<8x32xf32> to vector<1x8x32xf32>
    tpu.vector_store %arg2[%c0_21, %c0_22, %c0_23], %76 {strides = array<i32>} : memref<1x8x32xf32, #tpu.memory_space<vmem>>, vector<1x8x32xf32>,
    return
  }
  func.func @transform_0(%arg0: i32) -> (i32, i32, i32) {
    %c0_i32 = arith.constant 0 : i32
    %c0_i32_0 = arith.constant 0 : i32
    %c0_i32_1 = arith.constant 0 : i32
    return %arg0, %c0_i32, %c0_i32_0 : i32, i32, i32
  }
  func.func @transform_1(%arg0: i32) -> (i32, i32, i32) {
    %c0_i32 = arith.constant 0 : i32
    %c0_i32_0 = arith.constant 0 : i32
    %c0_i32_1 = arith.constant 0 : i32
    return %arg0, %c0_i32, %c0_i32_0 : i32, i32, i32
  }
}

module attributes {stable_mosaic.version = 11 : i64} {
  func.func @kernel(%arg0: i32, %arg1: i32, %arg2: i32, %arg3: memref<16x32xf32, #tpu.memory_space<vmem>>, %arg4: memref<32x32xf32, #tpu.memory_space<vmem>>, %arg5: memref<1x32xf32, #tpu.memory_space<vmem>>, %arg6: memref<16x32xf32, #tpu.memory_space<vmem>>, %arg7: memref<1x32xf32, #tpu.memory_space<vmem>>, %arg8: memref<1x32xf32, #tpu.memory_space<vmem>>, %arg9: memref<16x32xf32, #tpu.memory_space<vmem>>, %arg10: memref<16x32xf32, #tpu.memory_space<vmem>>) attributes {dimension_semantics = [#tpu.dimension_semantics<parallel>, #tpu.dimension_semantics<parallel>, #tpu.dimension_semantics<arbitrary>], iteration_bounds = array<i64: 1, 1, 1>, scalar_prefetch = 0 : i64, scratch_operands = 1 : i64, tpu.core_type = #tpu.core_type<tc>, window_params = [{transform_indices = @transform_0, window_bounds = array<i64: 16, 32>}, {transform_indices = @transform_1, window_bounds = array<i64: 32, 32>}, {transform_indices = @transform_2, window_bounds = array<i64: 1, 32>}, {transform_indices = @transform_3, window_bounds = array<i64: 16, 32>}, {transform_indices = @transform_4, window_bounds = array<i64: 1, 32>}, {transform_indices = @transform_5, window_bounds = array<i64: 1, 32>}, {transform_indices = @transform_6, window_bounds = array<i64: 16, 32>}]} {
    %c0_i32 = arith.constant 0 : i32
    %0 = arith.cmpi eq, %arg2, %c0_i32 : i32
    %1 = arith.extui %0 : i1 to i32
    %c0_i32_0 = arith.constant 0 : i32
    %2 = arith.cmpi ne, %1, %c0_i32_0 : i32
    scf.if %2 {
      %cst_10 = arith.constant 0.000000e+00 : f32
      %12 = vector.broadcast %cst_10 : f32 to vector<16x32xf32>
      %c0_11 = arith.constant 0 : index
      %c0_12 = arith.constant 0 : index
      %13 = vector.load %arg10[%c0_11, %c0_12] : memref<16x32xf32, #tpu.memory_space<vmem>>, vector<16x32xf32>
      tpu.vector_store %arg10[%c0_11, %c0_12], %12 {strides = array<i32>} : memref<16x32xf32, #tpu.memory_space<vmem>>, vector<16x32xf32>,
    } else {
    }
    %c0 = arith.constant 0 : index
    %c0_1 = arith.constant 0 : index
    %3 = vector.load %arg10[%c0, %c0_1] : memref<16x32xf32, #tpu.memory_space<vmem>>, vector<16x32xf32>
    %c0_2 = arith.constant 0 : index
    %c0_3 = arith.constant 0 : index
    %4 = vector.load %arg3[%c0_2, %c0_3] : memref<16x32xf32, #tpu.memory_space<vmem>>, vector<16x32xf32>
    %c0_4 = arith.constant 0 : index
    %c0_5 = arith.constant 0 : index
    %5 = vector.load %arg4[%c0_4, %c0_5] : memref<32x32xf32, #tpu.memory_space<vmem>>, vector<32x32xf32>
    %cst = arith.constant dense<0.000000e+00> : vector<16x32xf32>
    %6 = tpu.matmul %4, %5, %cst {dimension_numbers = #tpu.dot_dimension_numbers<[1], [0], [0], [1], [0, 0, 1, 1], [], []>} : vector<16x32xf32>, vector<32x32xf32>, vector<16x32xf32> -> vector<16x32xf32>
    %7 = arith.addf %3, %6 : vector<16x32xf32>
    %c0_6 = arith.constant 0 : index
    %c0_7 = arith.constant 0 : index
    %8 = vector.load %arg10[%c0_6, %c0_7] : memref<16x32xf32, #tpu.memory_space<vmem>>, vector<16x32xf32>
    tpu.vector_store %arg10[%c0_6, %c0_7], %7 {strides = array<i32>} : memref<16x32xf32, #tpu.memory_space<vmem>>, vector<16x32xf32>,
    %c0_i32_8 = arith.constant 0 : i32
    %9 = arith.cmpi eq, %arg2, %c0_i32_8 : i32
    %10 = arith.extui %9 : i1 to i32
    %c0_i32_9 = arith.constant 0 : i32
    %11 = arith.cmpi ne, %10, %c0_i32_9 : i32
    scf.if %11 {
      %c0_10 = arith.constant 0 : index
      %c0_11 = arith.constant 0 : index
      %12 = vector.load %arg10[%c0_10, %c0_11] : memref<16x32xf32, #tpu.memory_space<vmem>>, vector<16x32xf32>
      %c0_12 = arith.constant 0 : index
      %c0_13 = arith.constant 0 : index
      %13 = vector.load %arg5[%c0_12, %c0_13] : memref<1x32xf32, #tpu.memory_space<vmem>>, vector<1x32xf32>
      %14 = vector.broadcast %13 : vector<1x32xf32> to vector<16x32xf32>
      %15 = arith.addf %12, %14 : vector<16x32xf32>
      %c0_14 = arith.constant 0 : index
      %c0_15 = arith.constant 0 : index
      %16 = vector.load %arg6[%c0_14, %c0_15] : memref<16x32xf32, #tpu.memory_space<vmem>>, vector<16x32xf32>
      %17 = arith.addf %15, %16 : vector<16x32xf32>
      %cst_16 = arith.constant dense<0.000000e+00> : vector<16xf32>
      %18 = vector.multi_reduction <add>, %17, %cst_16 [1] : vector<16x32xf32> to vector<16xf32>
      %19 = vector.shape_cast %18 : vector<16xf32> to vector<16x1xf32>
      %cst_17 = arith.constant 3.200000e+01 : f32
      %20 = vector.broadcast %cst_17 : f32 to vector<16x1xf32>
      %21 = arith.divf %19, %20 : vector<16x1xf32>
      %22 = vector.broadcast %21 : vector<16x1xf32> to vector<16x32xf32>
      %23 = arith.subf %17, %22 : vector<16x32xf32>
      %24 = arith.mulf %23, %23 : vector<16x32xf32>
      %cst_18 = arith.constant dense<0.000000e+00> : vector<16xf32>
      %25 = vector.multi_reduction <add>, %24, %cst_18 [1] : vector<16x32xf32> to vector<16xf32>
      %26 = vector.shape_cast %25 : vector<16xf32> to vector<16x1xf32>
      %cst_19 = arith.constant 3.200000e+01 : f32
      %27 = vector.broadcast %cst_19 : f32 to vector<16x1xf32>
      %28 = arith.divf %26, %27 : vector<16x1xf32>
      %29 = vector.broadcast %21 : vector<16x1xf32> to vector<16x32xf32>
      %30 = arith.subf %17, %29 : vector<16x32xf32>
      %cst_20 = arith.constant 9.99999996E-13 : f32
      %31 = vector.broadcast %cst_20 : f32 to vector<16x1xf32>
      %32 = arith.addf %28, %31 : vector<16x1xf32>
      %33 = math.rsqrt %32 : vector<16x1xf32>
      %34 = vector.broadcast %33 : vector<16x1xf32> to vector<16x32xf32>
      %35 = arith.mulf %30, %34 : vector<16x32xf32>
      %c0_21 = arith.constant 0 : index
      %c0_22 = arith.constant 0 : index
      %36 = vector.load %arg7[%c0_21, %c0_22] : memref<1x32xf32, #tpu.memory_space<vmem>>, vector<1x32xf32>
      %37 = vector.broadcast %36 : vector<1x32xf32> to vector<16x32xf32>
      %38 = arith.mulf %35, %37 : vector<16x32xf32>
      %c0_23 = arith.constant 0 : index
      %c0_24 = arith.constant 0 : index
      %39 = vector.load %arg8[%c0_23, %c0_24] : memref<1x32xf32, #tpu.memory_space<vmem>>, vector<1x32xf32>
      %40 = vector.broadcast %39 : vector<1x32xf32> to vector<16x32xf32>
      %41 = arith.addf %38, %40 : vector<16x32xf32>
      %c0_25 = arith.constant 0 : index
      %c0_26 = arith.constant 0 : index
      %42 = vector.load %arg9[%c0_25, %c0_26] : memref<16x32xf32, #tpu.memory_space<vmem>>, vector<16x32xf32>
      tpu.vector_store %arg9[%c0_25, %c0_26], %41 {strides = array<i32>} : memref<16x32xf32, #tpu.memory_space<vmem>>, vector<16x32xf32>,
    } else {
    }
    return
  }
  func.func @transform_0(%arg0: i32, %arg1: i32, %arg2: i32) -> (i32, i32) {
    %c0_i32 = arith.constant 0 : i32
    return %arg0, %arg2 : i32, i32
  }
  func.func @transform_1(%arg0: i32, %arg1: i32, %arg2: i32) -> (i32, i32) {
    %c0_i32 = arith.constant 0 : i32
    return %arg2, %arg1 : i32, i32
  }
  func.func @transform_2(%arg0: i32, %arg1: i32, %arg2: i32) -> (i32, i32) {
    %c0_i32 = arith.constant 0 : i32
    %c0_i32_0 = arith.constant 0 : i32
    return %c0_i32, %arg1 : i32, i32
  }
  func.func @transform_3(%arg0: i32, %arg1: i32, %arg2: i32) -> (i32, i32) {
    %c0_i32 = arith.constant 0 : i32
    return %arg0, %arg1 : i32, i32
  }
  func.func @transform_4(%arg0: i32, %arg1: i32, %arg2: i32) -> (i32, i32) {
    %c0_i32 = arith.constant 0 : i32
    %c0_i32_0 = arith.constant 0 : i32
    return %c0_i32, %arg1 : i32, i32
  }
  func.func @transform_5(%arg0: i32, %arg1: i32, %arg2: i32) -> (i32, i32) {
    %c0_i32 = arith.constant 0 : i32
    %c0_i32_0 = arith.constant 0 : i32
    return %c0_i32, %arg1 : i32, i32
  }
  func.func @transform_6(%arg0: i32, %arg1: i32, %arg2: i32) -> (i32, i32) {
    %c0_i32 = arith.constant 0 : i32
    return %arg0, %arg1 : i32, i32
  }
}

module attributes {stable_mosaic.version = 11 : i64} {
  func.func @kernel(%arg0: i32, %arg1: i32, %arg2: i32, %arg3: memref<16x32xf32, #tpu.memory_space<vmem>>, %arg4: memref<32x32xf32, #tpu.memory_space<vmem>>, %arg5: memref<1x32xf32, #tpu.memory_space<vmem>>, %arg6: memref<16x32xf32, #tpu.memory_space<vmem>>, %arg7: memref<16x32xf32, #tpu.memory_space<vmem>>) attributes {dimension_semantics = [#tpu.dimension_semantics<parallel>, #tpu.dimension_semantics<parallel>, #tpu.dimension_semantics<arbitrary>], iteration_bounds = array<i64: 1, 1, 1>, scalar_prefetch = 0 : i64, scratch_operands = 1 : i64, tpu.core_type = #tpu.core_type<tc>, window_params = [{transform_indices = @transform_0, window_bounds = array<i64: 16, 32>}, {transform_indices = @transform_1, window_bounds = array<i64: 32, 32>}, {transform_indices = @transform_2, window_bounds = array<i64: 1, 32>}, {transform_indices = @transform_3, window_bounds = array<i64: 16, 32>}]} {
    %c0_i32 = arith.constant 0 : i32
    %0 = arith.cmpi eq, %arg2, %c0_i32 : i32
    %1 = arith.extui %0 : i1 to i32
    %c0_i32_0 = arith.constant 0 : i32
    %2 = arith.cmpi ne, %1, %c0_i32_0 : i32
    scf.if %2 {
      %cst_10 = arith.constant 0.000000e+00 : f32
      %12 = vector.broadcast %cst_10 : f32 to vector<16x32xf32>
      %c0_11 = arith.constant 0 : index
      %c0_12 = arith.constant 0 : index
      %13 = vector.load %arg7[%c0_11, %c0_12] : memref<16x32xf32, #tpu.memory_space<vmem>>, vector<16x32xf32>
      tpu.vector_store %arg7[%c0_11, %c0_12], %12 {strides = array<i32>} : memref<16x32xf32, #tpu.memory_space<vmem>>, vector<16x32xf32>,
    } else {
    }
    %c0 = arith.constant 0 : index
    %c0_1 = arith.constant 0 : index
    %3 = vector.load %arg7[%c0, %c0_1] : memref<16x32xf32, #tpu.memory_space<vmem>>, vector<16x32xf32>
    %c0_2 = arith.constant 0 : index
    %c0_3 = arith.constant 0 : index
    %4 = vector.load %arg3[%c0_2, %c0_3] : memref<16x32xf32, #tpu.memory_space<vmem>>, vector<16x32xf32>
    %c0_4 = arith.constant 0 : index
    %c0_5 = arith.constant 0 : index
    %5 = vector.load %arg4[%c0_4, %c0_5] : memref<32x32xf32, #tpu.memory_space<vmem>>, vector<32x32xf32>
    %cst = arith.constant dense<0.000000e+00> : vector<16x32xf32>
    %6 = tpu.matmul %4, %5, %cst {dimension_numbers = #tpu.dot_dimension_numbers<[1], [0], [0], [1], [0, 0, 1, 1], [], []>} : vector<16x32xf32>, vector<32x32xf32>, vector<16x32xf32> -> vector<16x32xf32>
    %7 = arith.addf %3, %6 : vector<16x32xf32>
    %c0_6 = arith.constant 0 : index
    %c0_7 = arith.constant 0 : index
    %8 = vector.load %arg7[%c0_6, %c0_7] : memref<16x32xf32, #tpu.memory_space<vmem>>, vector<16x32xf32>
    tpu.vector_store %arg7[%c0_6, %c0_7], %7 {strides = array<i32>} : memref<16x32xf32, #tpu.memory_space<vmem>>, vector<16x32xf32>,
    %c0_i32_8 = arith.constant 0 : i32
    %9 = arith.cmpi eq, %arg2, %c0_i32_8 : i32
    %10 = arith.extui %9 : i1 to i32
    %c0_i32_9 = arith.constant 0 : i32
    %11 = arith.cmpi ne, %10, %c0_i32_9 : i32
    scf.if %11 {
      %c0_10 = arith.constant 0 : index
      %c0_11 = arith.constant 0 : index
      %12 = vector.load %arg7[%c0_10, %c0_11] : memref<16x32xf32, #tpu.memory_space<vmem>>, vector<16x32xf32>
      %c0_12 = arith.constant 0 : index
      %c0_13 = arith.constant 0 : index
      %13 = vector.load %arg5[%c0_12, %c0_13] : memref<1x32xf32, #tpu.memory_space<vmem>>, vector<1x32xf32>
      %14 = vector.broadcast %13 : vector<1x32xf32> to vector<16x32xf32>
      %15 = arith.addf %12, %14 : vector<16x32xf32>
      %c0_14 = arith.constant 0 : index
      %c0_15 = arith.constant 0 : index
      %16 = vector.load %arg6[%c0_14, %c0_15] : memref<16x32xf32, #tpu.memory_space<vmem>>, vector<16x32xf32>
      tpu.vector_store %arg6[%c0_14, %c0_15], %15 {strides = array<i32>} : memref<16x32xf32, #tpu.memory_space<vmem>>, vector<16x32xf32>,
    } else {
    }
    return
  }
  func.func @transform_0(%arg0: i32, %arg1: i32, %arg2: i32) -> (i32, i32) {
    %c0_i32 = arith.constant 0 : i32
    return %arg0, %arg2 : i32, i32
  }
  func.func @transform_1(%arg0: i32, %arg1: i32, %arg2: i32) -> (i32, i32) {
    %c0_i32 = arith.constant 0 : i32
    return %arg2, %arg1 : i32, i32
  }
  func.func @transform_2(%arg0: i32, %arg1: i32, %arg2: i32) -> (i32, i32) {
    %c0_i32 = arith.constant 0 : i32
    %c0_i32_0 = arith.constant 0 : i32
    return %c0_i32, %arg1 : i32, i32
  }
  func.func @transform_3(%arg0: i32, %arg1: i32, %arg2: i32) -> (i32, i32) {
    %c0_i32 = arith.constant 0 : i32
    return %arg0, %arg1 : i32, i32
  }
}

module attributes {stable_mosaic.version = 11 : i64} {
  func.func @kernel(%arg0: i32, %arg1: memref<1x8x32xf32, #tpu.memory_space<vmem>>, %arg2: memref<1x8x64xf32, #tpu.memory_space<vmem>>, %arg3: memref<1x8x32xf32, #tpu.memory_space<vmem>>) attributes {dimension_semantics = [#tpu.dimension_semantics<parallel>], iteration_bounds = array<i64: 2>, scalar_prefetch = 0 : i64, scratch_operands = 0 : i64, tpu.core_type = #tpu.core_type<tc>, window_params = [{transform_indices = @transform_0, window_bounds = array<i64: 1, 8, 32>}, {transform_indices = @transform_1, window_bounds = array<i64: 1, 8, 64>}, {transform_indices = @transform_2, window_bounds = array<i64: 1, 8, 32>}]} {
    %c0 = arith.constant 0 : index
    %c0_0 = arith.constant 0 : index
    %c0_1 = arith.constant 0 : index
    %0 = vector.load %arg1[%c0, %c0_0, %c0_1] : memref<1x8x32xf32, #tpu.memory_space<vmem>>, vector<1x8x32xf32>
    %1 = vector.shape_cast %0 : vector<1x8x32xf32> to vector<8x32xf32>
    %c0_2 = arith.constant 0 : index
    %c0_3 = arith.constant 0 : index
    %c0_4 = arith.constant 0 : index
    %2 = vector.load %arg2[%c0_2, %c0_3, %c0_4] : memref<1x8x64xf32, #tpu.memory_space<vmem>>, vector<1x8x64xf32>
    %3 = vector.shape_cast %2 : vector<1x8x64xf32> to vector<8x64xf32>
    %4 = vector.extract_strided_slice %3 {offsets = [0, 0], sizes = [8, 32], strides = [1, 1]} : vector<8x64xf32> to vector<8x32xf32>
    %5 = vector.extract_strided_slice %3 {offsets = [0, 32], sizes = [8, 32], strides = [1, 1]} : vector<8x64xf32> to vector<8x32xf32>
    %6 = vector.extract_strided_slice %1 {offsets = [0, 0], sizes = [8, 8], strides = [1, 1]} : vector<8x32xf32> to vector<8x8xf32>
    %cst = arith.constant 0.353553385 : f32
    %7 = vector.broadcast %cst : f32 to vector<8x8xf32>
    %8 = arith.mulf %6, %7 : vector<8x8xf32>
    %9 = vector.extract_strided_slice %4 {offsets = [0, 0], sizes = [8, 8], strides = [1, 1]} : vector<8x32xf32> to vector<8x8xf32>
    %10 = vector.extract_strided_slice %5 {offsets = [0, 0], sizes = [8, 8], strides = [1, 1]} : vector<8x32xf32> to vector<8x8xf32>
    %cst_5 = arith.constant dense<0.000000e+00> : vector<8x8xf32>
    %11 = tpu.matmul %8, %9, %cst_5 {dimension_numbers = #tpu.dot_dimension_numbers<[1], [1], [0], [0], [0, 0, 1, 0], [], []>} : vector<8x8xf32>, vector<8x8xf32>, vector<8x8xf32> -> vector<8x8xf32>
    %cst_6 = arith.constant dense<0xFF800000> : vector<8xf32>
    %12 = vector.multi_reduction <maximumf>, %11, %cst_6 [1] : vector<8x8xf32> to vector<8xf32>
    %13 = vector.shape_cast %12 : vector<8xf32> to vector<8x1xf32>
    %14 = vector.broadcast %13 : vector<8x1xf32> to vector<8x8xf32>
    %15 = arith.subf %11, %14 : vector<8x8xf32>
    %16 = math.exp %15 : vector<8x8xf32>
    %cst_7 = arith.constant dense<0.000000e+00> : vector<8xf32>
    %17 = vector.multi_reduction <add>, %16, %cst_7 [1] : vector<8x8xf32> to vector<8xf32>
    %18 = vector.shape_cast %17 : vector<8xf32> to vector<8x1xf32>
    %19 = tpu.reciprocal %18 {approx = true} : vector<8x1xf32> -> vector<8x1xf32>
    %20 = vector.broadcast %19 : vector<8x1xf32> to vector<8x8xf32>
    %21 = arith.mulf %16, %20 : vector<8x8xf32>
    %cst_8 = arith.constant dense<0.000000e+00> : vector<8x8xf32>
    %22 = tpu.matmul %21, %10, %cst_8 {dimension_numbers = #tpu.dot_dimension_numbers<[1], [0], [0], [1], [0, 0, 1, 1], [], []>} : vector<8x8xf32>, vector<8x8xf32>, vector<8x8xf32> -> vector<8x8xf32>
    %23 = vector.extract_strided_slice %1 {offsets = [0, 8], sizes = [8, 8], strides = [1, 1]} : vector<8x32xf32> to vector<8x8xf32>
    %cst_9 = arith.constant 0.353553385 : f32
    %24 = vector.broadcast %cst_9 : f32 to vector<8x8xf32>
    %25 = arith.mulf %23, %24 : vector<8x8xf32>
    %26 = vector.extract_strided_slice %4 {offsets = [0, 8], sizes = [8, 8], strides = [1, 1]} : vector<8x32xf32> to vector<8x8xf32>
    %27 = vector.extract_strided_slice %5 {offsets = [0, 8], sizes = [8, 8], strides = [1, 1]} : vector<8x32xf32> to vector<8x8xf32>
    %cst_10 = arith.constant dense<0.000000e+00> : vector<8x8xf32>
    %28 = tpu.matmul %25, %26, %cst_10 {dimension_numbers = #tpu.dot_dimension_numbers<[1], [1], [0], [0], [0, 0, 1, 0], [], []>} : vector<8x8xf32>, vector<8x8xf32>, vector<8x8xf32> -> vector<8x8xf32>
    %cst_11 = arith.constant dense<0xFF800000> : vector<8xf32>
    %29 = vector.multi_reduction <maximumf>, %28, %cst_11 [1] : vector<8x8xf32> to vector<8xf32>
    %30 = vector.shape_cast %29 : vector<8xf32> to vector<8x1xf32>
    %31 = vector.broadcast %30 : vector<8x1xf32> to vector<8x8xf32>
    %32 = arith.subf %28, %31 : vector<8x8xf32>
    %33 = math.exp %32 : vector<8x8xf32>
    %cst_12 = arith.constant dense<0.000000e+00> : vector<8xf32>
    %34 = vector.multi_reduction <add>, %33, %cst_12 [1] : vector<8x8xf32> to vector<8xf32>
    %35 = vector.shape_cast %34 : vector<8xf32> to vector<8x1xf32>
    %36 = tpu.reciprocal %35 {approx = true} : vector<8x1xf32> -> vector<8x1xf32>
    %37 = vector.broadcast %36 : vector<8x1xf32> to vector<8x8xf32>
    %38 = arith.mulf %33, %37 : vector<8x8xf32>
    %cst_13 = arith.constant dense<0.000000e+00> : vector<8x8xf32>
    %39 = tpu.matmul %38, %27, %cst_13 {dimension_numbers = #tpu.dot_dimension_numbers<[1], [0], [0], [1], [0, 0, 1, 1], [], []>} : vector<8x8xf32>, vector<8x8xf32>, vector<8x8xf32> -> vector<8x8xf32>
    %40 = vector.extract_strided_slice %1 {offsets = [0, 16], sizes = [8, 8], strides = [1, 1]} : vector<8x32xf32> to vector<8x8xf32>
    %cst_14 = arith.constant 0.353553385 : f32
    %41 = vector.broadcast %cst_14 : f32 to vector<8x8xf32>
    %42 = arith.mulf %40, %41 : vector<8x8xf32>
    %43 = vector.extract_strided_slice %4 {offsets = [0, 16], sizes = [8, 8], strides = [1, 1]} : vector<8x32xf32> to vector<8x8xf32>
    %44 = vector.extract_strided_slice %5 {offsets = [0, 16], sizes = [8, 8], strides = [1, 1]} : vector<8x32xf32> to vector<8x8xf32>
    %cst_15 = arith.constant dense<0.000000e+00> : vector<8x8xf32>
    %45 = tpu.matmul %42, %43, %cst_15 {dimension_numbers = #tpu.dot_dimension_numbers<[1], [1], [0], [0], [0, 0, 1, 0], [], []>} : vector<8x8xf32>, vector<8x8xf32>, vector<8x8xf32> -> vector<8x8xf32>
    %cst_16 = arith.constant dense<0xFF800000> : vector<8xf32>
    %46 = vector.multi_reduction <maximumf>, %45, %cst_16 [1] : vector<8x8xf32> to vector<8xf32>
    %47 = vector.shape_cast %46 : vector<8xf32> to vector<8x1xf32>
    %48 = vector.broadcast %47 : vector<8x1xf32> to vector<8x8xf32>
    %49 = arith.subf %45, %48 : vector<8x8xf32>
    %50 = math.exp %49 : vector<8x8xf32>
    %cst_17 = arith.constant dense<0.000000e+00> : vector<8xf32>
    %51 = vector.multi_reduction <add>, %50, %cst_17 [1] : vector<8x8xf32> to vector<8xf32>
    %52 = vector.shape_cast %51 : vector<8xf32> to vector<8x1xf32>
    %53 = tpu.reciprocal %52 {approx = true} : vector<8x1xf32> -> vector<8x1xf32>
    %54 = vector.broadcast %53 : vector<8x1xf32> to vector<8x8xf32>
    %55 = arith.mulf %50, %54 : vector<8x8xf32>
    %cst_18 = arith.constant dense<0.000000e+00> : vector<8x8xf32>
    %56 = tpu.matmul %55, %44, %cst_18 {dimension_numbers = #tpu.dot_dimension_numbers<[1], [0], [0], [1], [0, 0, 1, 1], [], []>} : vector<8x8xf32>, vector<8x8xf32>, vector<8x8xf32> -> vector<8x8xf32>
    %57 = vector.extract_strided_slice %1 {offsets = [0, 24], sizes = [8, 8], strides = [1, 1]} : vector<8x32xf32> to vector<8x8xf32>
    %cst_19 = arith.constant 0.353553385 : f32
    %58 = vector.broadcast %cst_19 : f32 to vector<8x8xf32>
    %59 = arith.mulf %57, %58 : vector<8x8xf32>
    %60 = vector.extract_strided_slice %4 {offsets = [0, 24], sizes = [8, 8], strides = [1, 1]} : vector<8x32xf32> to vector<8x8xf32>
    %61 = vector.extract_strided_slice %5 {offsets = [0, 24], sizes = [8, 8], strides = [1, 1]} : vector<8x32xf32> to vector<8x8xf32>
    %cst_20 = arith.constant dense<0.000000e+00> : vector<8x8xf32>
    %62 = tpu.matmul %59, %60, %cst_20 {dimension_numbers = #tpu.dot_dimension_numbers<[1], [1], [0], [0], [0, 0, 1, 0], [], []>} : vector<8x8xf32>, vector<8x8xf32>, vector<8x8xf32> -> vector<8x8xf32>
    %cst_21 = arith.constant dense<0xFF800000> : vector<8xf32>
    %63 = vector.multi_reduction <maximumf>, %62, %cst_21 [1] : vector<8x8xf32> to vector<8xf32>
    %64 = vector.shape_cast %63 : vector<8xf32> to vector<8x1xf32>
    %65 = vector.broadcast %64 : vector<8x1xf32> to vector<8x8xf32>
    %66 = arith.subf %62, %65 : vector<8x8xf32>
    %67 = math.exp %66 : vector<8x8xf32>
    %cst_22 = arith.constant dense<0.000000e+00> : vector<8xf32>
    %68 = vector.multi_reduction <add>, %67, %cst_22 [1] : vector<8x8xf32> to vector<8xf32>
    %69 = vector.shape_cast %68 : vector<8xf32> to vector<8x1xf32>
    %70 = tpu.reciprocal %69 {approx = true} : vector<8x1xf32> -> vector<8x1xf32>
    %71 = vector.broadcast %70 : vector<8x1xf32> to vector<8x8xf32>
    %72 = arith.mulf %67, %71 : vector<8x8xf32>
    %cst_23 = arith.constant dense<0.000000e+00> : vector<8x8xf32>
    %73 = tpu.matmul %72, %61, %cst_23 {dimension_numbers = #tpu.dot_dimension_numbers<[1], [0], [0], [1], [0, 0, 1, 1], [], []>} : vector<8x8xf32>, vector<8x8xf32>, vector<8x8xf32> -> vector<8x8xf32>
    %74 = tpu.concatenate %22, %39, %56, %73 in 1 : vector<8x8xf32>, vector<8x8xf32>, vector<8x8xf32>, vector<8x8xf32> -> vector<8x32xf32>
    %c0_24 = arith.constant 0 : index
    %c0_25 = arith.constant 0 : index
    %c0_26 = arith.constant 0 : index
    %75 = vector.load %arg3[%c0_24, %c0_25, %c0_26] : memref<1x8x32xf32, #tpu.memory_space<vmem>>, vector<1x8x32xf32>
    %76 = vector.shape_cast %75 : vector<1x8x32xf32> to vector<8x32xf32>
    %77 = vector.shape_cast %74 : vector<8x32xf32> to vector<1x8x32xf32>
    tpu.vector_store %arg3[%c0_24, %c0_25, %c0_26], %77 {strides = array<i32>} : memref<1x8x32xf32, #tpu.memory_space<vmem>>, vector<1x8x32xf32>,
    return
  }
  func.func @transform_0(%arg0: i32) -> (i32, i32, i32) {
    %c0_i32 = arith.constant 0 : i32
    %c0_i32_0 = arith.constant 0 : i32
    %c0_i32_1 = arith.constant 0 : i32
    return %arg0, %c0_i32, %c0_i32_0 : i32, i32, i32
  }
  func.func @transform_1(%arg0: i32) -> (i32, i32, i32) {
    %c0_i32 = arith.constant 0 : i32
    %c0_i32_0 = arith.constant 0 : i32
    %c0_i32_1 = arith.constant 0 : i32
    return %arg0, %c0_i32, %c0_i32_0 : i32, i32, i32
  }
  func.func @transform_2(%arg0: i32) -> (i32, i32, i32) {
    %c0_i32 = arith.constant 0 : i32
    %c0_i32_0 = arith.constant 0 : i32
    %c0_i32_1 = arith.constant 0 : i32
    return %arg0, %c0_i32, %c0_i32_0 : i32, i32, i32
  }
}

module attributes {stable_mosaic.version = 11 : i64} {
  func.func @kernel(%arg0: i32, %arg1: i32, %arg2: i32, %arg3: memref<16x32xf32, #tpu.memory_space<vmem>>, %arg4: memref<32x64xf32, #tpu.memory_space<vmem>>, %arg5: memref<1x64xf32, #tpu.memory_space<vmem>>, %arg6: memref<16x64xf32, #tpu.memory_space<vmem>>, %arg7: memref<16x64xf32, #tpu.memory_space<vmem>>) attributes {dimension_semantics = [#tpu.dimension_semantics<parallel>, #tpu.dimension_semantics<parallel>, #tpu.dimension_semantics<arbitrary>], iteration_bounds = array<i64: 1, 1, 1>, scalar_prefetch = 0 : i64, scratch_operands = 1 : i64, tpu.core_type = #tpu.core_type<tc>, window_params = [{transform_indices = @transform_0, window_bounds = array<i64: 16, 32>}, {transform_indices = @transform_1, window_bounds = array<i64: 32, 64>}, {transform_indices = @transform_2, window_bounds = array<i64: 1, 64>}, {transform_indices = @transform_3, window_bounds = array<i64: 16, 64>}]} {
    %c0_i32 = arith.constant 0 : i32
    %0 = arith.cmpi eq, %arg2, %c0_i32 : i32
    %1 = arith.extui %0 : i1 to i32
    %c0_i32_0 = arith.constant 0 : i32
    %2 = arith.cmpi ne, %1, %c0_i32_0 : i32
    scf.if %2 {
      %cst_10 = arith.constant 0.000000e+00 : f32
      %12 = vector.broadcast %cst_10 : f32 to vector<16x64xf32>
      %c0_11 = arith.constant 0 : index
      %c0_12 = arith.constant 0 : index
      %13 = vector.load %arg7[%c0_11, %c0_12] : memref<16x64xf32, #tpu.memory_space<vmem>>, vector<16x64xf32>
      tpu.vector_store %arg7[%c0_11, %c0_12], %12 {strides = array<i32>} : memref<16x64xf32, #tpu.memory_space<vmem>>, vector<16x64xf32>,
    } else {
    }
    %c0 = arith.constant 0 : index
    %c0_1 = arith.constant 0 : index
    %3 = vector.load %arg7[%c0, %c0_1] : memref<16x64xf32, #tpu.memory_space<vmem>>, vector<16x64xf32>
    %c0_2 = arith.constant 0 : index
    %c0_3 = arith.constant 0 : index
    %4 = vector.load %arg3[%c0_2, %c0_3] : memref<16x32xf32, #tpu.memory_space<vmem>>, vector<16x32xf32>
    %c0_4 = arith.constant 0 : index
    %c0_5 = arith.constant 0 : index
    %5 = vector.load %arg4[%c0_4, %c0_5] : memref<32x64xf32, #tpu.memory_space<vmem>>, vector<32x64xf32>
    %cst = arith.constant dense<0.000000e+00> : vector<16x64xf32>
    %6 = tpu.matmul %4, %5, %cst {dimension_numbers = #tpu.dot_dimension_numbers<[1], [0], [0], [1], [0, 0, 1, 1], [], []>} : vector<16x32xf32>, vector<32x64xf32>, vector<16x64xf32> -> vector<16x64xf32>
    %7 = arith.addf %3, %6 : vector<16x64xf32>
    %c0_6 = arith.constant 0 : index
    %c0_7 = arith.constant 0 : index
    %8 = vector.load %arg7[%c0_6, %c0_7] : memref<16x64xf32, #tpu.memory_space<vmem>>, vector<16x64xf32>
    tpu.vector_store %arg7[%c0_6, %c0_7], %7 {strides = array<i32>} : memref<16x64xf32, #tpu.memory_space<vmem>>, vector<16x64xf32>,
    %c0_i32_8 = arith.constant 0 : i32
    %9 = arith.cmpi eq, %arg2, %c0_i32_8 : i32
    %10 = arith.extui %9 : i1 to i32
    %c0_i32_9 = arith.constant 0 : i32
    %11 = arith.cmpi ne, %10, %c0_i32_9 : i32
    scf.if %11 {
      %c0_10 = arith.constant 0 : index
      %c0_11 = arith.constant 0 : index
      %12 = vector.load %arg7[%c0_10, %c0_11] : memref<16x64xf32, #tpu.memory_space<vmem>>, vector<16x64xf32>
      %c0_12 = arith.constant 0 : index
      %c0_13 = arith.constant 0 : index
      %13 = vector.load %arg5[%c0_12, %c0_13] : memref<1x64xf32, #tpu.memory_space<vmem>>, vector<1x64xf32>
      %14 = vector.broadcast %13 : vector<1x64xf32> to vector<16x64xf32>
      %15 = arith.addf %12, %14 : vector<16x64xf32>
      %cst_14 = arith.constant 5.000000e-01 : f32
      %16 = vector.broadcast %cst_14 : f32 to vector<16x64xf32>
      %17 = arith.mulf %16, %15 : vector<16x64xf32>
      %cst_15 = arith.constant 0.707106769 : f32
      %18 = vector.broadcast %cst_15 : f32 to vector<16x64xf32>
      %19 = arith.mulf %15, %18 : vector<16x64xf32>
      %20 = math.erf %19 : vector<16x64xf32>
      %cst_16 = arith.constant 1.000000e+00 : f32
      %21 = vector.broadcast %cst_16 : f32 to vector<16x64xf32>
      %22 = arith.addf %21, %20 : vector<16x64xf32>
      %23 = arith.mulf %17, %22 : vector<16x64xf32>
      %c0_17 = arith.constant 0 : index
      %c0_18 = arith.constant 0 : index
      %24 = vector.load %arg6[%c0_17, %c0_18] : memref<16x64xf32, #tpu.memory_space<vmem>>, vector<16x64xf32>
      tpu.vector_store %arg6[%c0_17, %c0_18], %23 {strides = array<i32>} : memref<16x64xf32, #tpu.memory_space<vmem>>, vector<16x64xf32>,
    } else {
    }
    return
  }
  func.func @transform_0(%arg0: i32, %arg1: i32, %arg2: i32) -> (i32, i32) {
    %c0_i32 = arith.constant 0 : i32
    return %arg0, %arg2 : i32, i32
  }
  func.func @transform_1(%arg0: i32, %arg1: i32, %arg2: i32) -> (i32, i32) {
    %c0_i32 = arith.constant 0 : i32
    return %arg2, %arg1 : i32, i32
  }
  func.func @transform_2(%arg0: i32, %arg1: i32, %arg2: i32) -> (i32, i32) {
    %c0_i32 = arith.constant 0 : i32
    %c0_i32_0 = arith.constant 0 : i32
    return %c0_i32, %arg1 : i32, i32
  }
  func.func @transform_3(%arg0: i32, %arg1: i32, %arg2: i32) -> (i32, i32) {
    %c0_i32 = arith.constant 0 : i32
    return %arg0, %arg1 : i32, i32
  }
}

module attributes {stable_mosaic.version = 11 : i64} {
  func.func @kernel(%arg0: i32, %arg1: i32, %arg2: i32, %arg3: memref<16x32xf32, #tpu.memory_space<vmem>>, %arg4: memref<32x32xf32, #tpu.memory_space<vmem>>, %arg5: memref<1x32xf32, #tpu.memory_space<vmem>>, %arg6: memref<16x32xf32, #tpu.memory_space<vmem>>, %arg7: memref<1x32xf32, #tpu.memory_space<vmem>>, %arg8: memref<1x32xf32, #tpu.memory_space<vmem>>, %arg9: memref<16x32xf32, #tpu.memory_space<vmem>>, %arg10: memref<16x32xf32, #tpu.memory_space<vmem>>) attributes {dimension_semantics = [#tpu.dimension_semantics<parallel>, #tpu.dimension_semantics<parallel>, #tpu.dimension_semantics<arbitrary>], iteration_bounds = array<i64: 1, 1, 1>, scalar_prefetch = 0 : i64, scratch_operands = 1 : i64, tpu.core_type = #tpu.core_type<tc>, window_params = [{transform_indices = @transform_0, window_bounds = array<i64: 16, 32>}, {transform_indices = @transform_1, window_bounds = array<i64: 32, 32>}, {transform_indices = @transform_2, window_bounds = array<i64: 1, 32>}, {transform_indices = @transform_3, window_bounds = array<i64: 16, 32>}, {transform_indices = @transform_4, window_bounds = array<i64: 1, 32>}, {transform_indices = @transform_5, window_bounds = array<i64: 1, 32>}, {transform_indices = @transform_6, window_bounds = array<i64: 16, 32>}]} {
    %c0_i32 = arith.constant 0 : i32
    %0 = arith.cmpi eq, %arg2, %c0_i32 : i32
    %1 = arith.extui %0 : i1 to i32
    %c0_i32_0 = arith.constant 0 : i32
    %2 = arith.cmpi ne, %1, %c0_i32_0 : i32
    scf.if %2 {
      %cst_10 = arith.constant 0.000000e+00 : f32
      %12 = vector.broadcast %cst_10 : f32 to vector<16x32xf32>
      %c0_11 = arith.constant 0 : index
      %c0_12 = arith.constant 0 : index
      %13 = vector.load %arg10[%c0_11, %c0_12] : memref<16x32xf32, #tpu.memory_space<vmem>>, vector<16x32xf32>
      tpu.vector_store %arg10[%c0_11, %c0_12], %12 {strides = array<i32>} : memref<16x32xf32, #tpu.memory_space<vmem>>, vector<16x32xf32>,
    } else {
    }
    %c0 = arith.constant 0 : index
    %c0_1 = arith.constant 0 : index
    %3 = vector.load %arg10[%c0, %c0_1] : memref<16x32xf32, #tpu.memory_space<vmem>>, vector<16x32xf32>
    %c0_2 = arith.constant 0 : index
    %c0_3 = arith.constant 0 : index
    %4 = vector.load %arg3[%c0_2, %c0_3] : memref<16x32xf32, #tpu.memory_space<vmem>>, vector<16x32xf32>
    %c0_4 = arith.constant 0 : index
    %c0_5 = arith.constant 0 : index
    %5 = vector.load %arg4[%c0_4, %c0_5] : memref<32x32xf32, #tpu.memory_space<vmem>>, vector<32x32xf32>
    %cst = arith.constant dense<0.000000e+00> : vector<16x32xf32>
    %6 = tpu.matmul %4, %5, %cst {dimension_numbers = #tpu.dot_dimension_numbers<[1], [0], [0], [1], [0, 0, 1, 1], [], []>} : vector<16x32xf32>, vector<32x32xf32>, vector<16x32xf32> -> vector<16x32xf32>
    %7 = arith.addf %3, %6 : vector<16x32xf32>
    %c0_6 = arith.constant 0 : index
    %c0_7 = arith.constant 0 : index
    %8 = vector.load %arg10[%c0_6, %c0_7] : memref<16x32xf32, #tpu.memory_space<vmem>>, vector<16x32xf32>
    tpu.vector_store %arg10[%c0_6, %c0_7], %7 {strides = array<i32>} : memref<16x32xf32, #tpu.memory_space<vmem>>, vector<16x32xf32>,
    %c0_i32_8 = arith.constant 0 : i32
    %9 = arith.cmpi eq, %arg2, %c0_i32_8 : i32
    %10 = arith.extui %9 : i1 to i32
    %c0_i32_9 = arith.constant 0 : i32
    %11 = arith.cmpi ne, %10, %c0_i32_9 : i32
    scf.if %11 {
      %c0_10 = arith.constant 0 : index
      %c0_11 = arith.constant 0 : index
      %12 = vector.load %arg10[%c0_10, %c0_11] : memref<16x32xf32, #tpu.memory_space<vmem>>, vector<16x32xf32>
      %c0_12 = arith.constant 0 : index
      %c0_13 = arith.constant 0 : index
      %13 = vector.load %arg5[%c0_12, %c0_13] : memref<1x32xf32, #tpu.memory_space<vmem>>, vector<1x32xf32>
      %14 = vector.broadcast %13 : vector<1x32xf32> to vector<16x32xf32>
      %15 = arith.addf %12, %14 : vector<16x32xf32>
      %c0_14 = arith.constant 0 : index
      %c0_15 = arith.constant 0 : index
      %16 = vector.load %arg6[%c0_14, %c0_15] : memref<16x32xf32, #tpu.memory_space<vmem>>, vector<16x32xf32>
      %17 = arith.addf %15, %16 : vector<16x32xf32>
      %cst_16 = arith.constant dense<0.000000e+00> : vector<16xf32>
      %18 = vector.multi_reduction <add>, %17, %cst_16 [1] : vector<16x32xf32> to vector<16xf32>
      %19 = vector.shape_cast %18 : vector<16xf32> to vector<16x1xf32>
      %cst_17 = arith.constant 3.200000e+01 : f32
      %20 = vector.broadcast %cst_17 : f32 to vector<16x1xf32>
      %21 = arith.divf %19, %20 : vector<16x1xf32>
      %22 = vector.broadcast %21 : vector<16x1xf32> to vector<16x32xf32>
      %23 = arith.subf %17, %22 : vector<16x32xf32>
      %24 = arith.mulf %23, %23 : vector<16x32xf32>
      %cst_18 = arith.constant dense<0.000000e+00> : vector<16xf32>
      %25 = vector.multi_reduction <add>, %24, %cst_18 [1] : vector<16x32xf32> to vector<16xf32>
      %26 = vector.shape_cast %25 : vector<16xf32> to vector<16x1xf32>
      %cst_19 = arith.constant 3.200000e+01 : f32
      %27 = vector.broadcast %cst_19 : f32 to vector<16x1xf32>
      %28 = arith.divf %26, %27 : vector<16x1xf32>
      %29 = vector.broadcast %21 : vector<16x1xf32> to vector<16x32xf32>
      %30 = arith.subf %17, %29 : vector<16x32xf32>
      %cst_20 = arith.constant 9.99999996E-13 : f32
      %31 = vector.broadcast %cst_20 : f32 to vector<16x1xf32>
      %32 = arith.addf %28, %31 : vector<16x1xf32>
      %33 = math.rsqrt %32 : vector<16x1xf32>
      %34 = vector.broadcast %33 : vector<16x1xf32> to vector<16x32xf32>
      %35 = arith.mulf %30, %34 : vector<16x32xf32>
      %c0_21 = arith.constant 0 : index
      %c0_22 = arith.constant 0 : index
      %36 = vector.load %arg7[%c0_21, %c0_22] : memref<1x32xf32, #tpu.memory_space<vmem>>, vector<1x32xf32>
      %37 = vector.broadcast %36 : vector<1x32xf32> to vector<16x32xf32>
      %38 = arith.mulf %35, %37 : vector<16x32xf32>
      %c0_23 = arith.constant 0 : index
      %c0_24 = arith.constant 0 : index
      %39 = vector.load %arg8[%c0_23, %c0_24] : memref<1x32xf32, #tpu.memory_space<vmem>>, vector<1x32xf32>
      %40 = vector.broadcast %39 : vector<1x32xf32> to vector<16x32xf32>
      %41 = arith.addf %38, %40 : vector<16x32xf32>
      %c0_25 = arith.constant 0 : index
      %c0_26 = arith.constant 0 : index
      %42 = vector.load %arg9[%c0_25, %c0_26] : memref<16x32xf32, #tpu.memory_space<vmem>>, vector<16x32xf32>
      tpu.vector_store %arg9[%c0_25, %c0_26], %41 {strides = array<i32>} : memref<16x32xf32, #tpu.memory_space<vmem>>, vector<16x32xf32>,
    } else {
    }
    return
  }
  func.func @transform_0(%arg0: i32, %arg1: i32, %arg2: i32) -> (i32, i32) {
    %c0_i32 = arith.constant 0 : i32
    return %arg0, %arg2 : i32, i32
  }
  func.func @transform_1(%arg0: i32, %arg1: i32, %arg2: i32) -> (i32, i32) {
    %c0_i32 = arith.constant 0 : i32
    return %arg2, %arg1 : i32, i32
  }
  func.func @transform_2(%arg0: i32, %arg1: i32, %arg2: i32) -> (i32, i32) {
    %c0_i32 = arith.constant 0 : i32
    %c0_i32_0 = arith.constant 0 : i32
    return %c0_i32, %arg1 : i32, i32
  }
  func.func @transform_3(%arg0: i32, %arg1: i32, %arg2: i32) -> (i32, i32) {
    %c0_i32 = arith.constant 0 : i32
    return %arg0, %arg1 : i32, i32
  }
  func.func @transform_4(%arg0: i32, %arg1: i32, %arg2: i32) -> (i32, i32) {
    %c0_i32 = arith.constant 0 : i32
    %c0_i32_0 = arith.constant 0 : i32
    return %c0_i32, %arg1 : i32, i32
  }
  func.func @transform_5(%arg0: i32, %arg1: i32, %arg2: i32) -> (i32, i32) {
    %c0_i32 = arith.constant 0 : i32
    %c0_i32_0 = arith.constant 0 : i32
    return %c0_i32, %arg1 : i32, i32
  }
  func.func @transform_6(%arg0: i32, %arg1: i32, %arg2: i32) -> (i32, i32) {
    %c0_i32 = arith.constant 0 : i32
    return %arg0, %arg1 : i32, i32
  }
}

module attributes {stable_mosaic.version = 11 : i64} {
  func.func @kernel(%arg0: i32, %arg1: i32, %arg2: i32, %arg3: memref<16x64xf32, #tpu.memory_space<vmem>>, %arg4: memref<64x32xf32, #tpu.memory_space<vmem>>, %arg5: memref<1x32xf32, #tpu.memory_space<vmem>>, %arg6: memref<16x32xf32, #tpu.memory_space<vmem>>, %arg7: memref<1x32xf32, #tpu.memory_space<vmem>>, %arg8: memref<1x32xf32, #tpu.memory_space<vmem>>, %arg9: memref<16x32xf32, #tpu.memory_space<vmem>>, %arg10: memref<16x32xf32, #tpu.memory_space<vmem>>) attributes {dimension_semantics = [#tpu.dimension_semantics<parallel>, #tpu.dimension_semantics<parallel>, #tpu.dimension_semantics<arbitrary>], iteration_bounds = array<i64: 1, 1, 1>, scalar_prefetch = 0 : i64, scratch_operands = 1 : i64, tpu.core_type = #tpu.core_type<tc>, window_params = [{transform_indices = @transform_0, window_bounds = array<i64: 16, 64>}, {transform_indices = @transform_1, window_bounds = array<i64: 64, 32>}, {transform_indices = @transform_2, window_bounds = array<i64: 1, 32>}, {transform_indices = @transform_3, window_bounds = array<i64: 16, 32>}, {transform_indices = @transform_4, window_bounds = array<i64: 1, 32>}, {transform_indices = @transform_5, window_bounds = array<i64: 1, 32>}, {transform_indices = @transform_6, window_bounds = array<i64: 16, 32>}]} {
    %c0_i32 = arith.constant 0 : i32
    %0 = arith.cmpi eq, %arg2, %c0_i32 : i32
    %1 = arith.extui %0 : i1 to i32
    %c0_i32_0 = arith.constant 0 : i32
    %2 = arith.cmpi ne, %1, %c0_i32_0 : i32
    scf.if %2 {
      %cst_10 = arith.constant 0.000000e+00 : f32
      %12 = vector.broadcast %cst_10 : f32 to vector<16x32xf32>
      %c0_11 = arith.constant 0 : index
      %c0_12 = arith.constant 0 : index
      %13 = vector.load %arg10[%c0_11, %c0_12] : memref<16x32xf32, #tpu.memory_space<vmem>>, vector<16x32xf32>
      tpu.vector_store %arg10[%c0_11, %c0_12], %12 {strides = array<i32>} : memref<16x32xf32, #tpu.memory_space<vmem>>, vector<16x32xf32>,
    } else {
    }
    %c0 = arith.constant 0 : index
    %c0_1 = arith.constant 0 : index
    %3 = vector.load %arg10[%c0, %c0_1] : memref<16x32xf32, #tpu.memory_space<vmem>>, vector<16x32xf32>
    %c0_2 = arith.constant 0 : index
    %c0_3 = arith.constant 0 : index
    %4 = vector.load %arg3[%c0_2, %c0_3] : memref<16x64xf32, #tpu.memory_space<vmem>>, vector<16x64xf32>
    %c0_4 = arith.constant 0 : index
    %c0_5 = arith.constant 0 : index
    %5 = vector.load %arg4[%c0_4, %c0_5] : memref<64x32xf32, #tpu.memory_space<vmem>>, vector<64x32xf32>
    %cst = arith.constant dense<0.000000e+00> : vector<16x32xf32>
    %6 = tpu.matmul %4, %5, %cst {dimension_numbers = #tpu.dot_dimension_numbers<[1], [0], [0], [1], [0, 0, 1, 1], [], []>} : vector<16x64xf32>, vector<64x32xf32>, vector<16x32xf32> -> vector<16x32xf32>
    %7 = arith.addf %3, %6 : vector<16x32xf32>
    %c0_6 = arith.constant 0 : index
    %c0_7 = arith.constant 0 : index
    %8 = vector.load %arg10[%c0_6, %c0_7] : memref<16x32xf32, #tpu.memory_space<vmem>>, vector<16x32xf32>
    tpu.vector_store %arg10[%c0_6, %c0_7], %7 {strides = array<i32>} : memref<16x32xf32, #tpu.memory_space<vmem>>, vector<16x32xf32>,
    %c0_i32_8 = arith.constant 0 : i32
    %9 = arith.cmpi eq, %arg2, %c0_i32_8 : i32
    %10 = arith.extui %9 : i1 to i32
    %c0_i32_9 = arith.constant 0 : i32
    %11 = arith.cmpi ne, %10, %c0_i32_9 : i32
    scf.if %11 {
      %c0_10 = arith.constant 0 : index
      %c0_11 = arith.constant 0 : index
      %12 = vector.load %arg10[%c0_10, %c0_11] : memref<16x32xf32, #tpu.memory_space<vmem>>, vector<16x32xf32>
      %c0_12 = arith.constant 0 : index
      %c0_13 = arith.constant 0 : index
      %13 = vector.load %arg5[%c0_12, %c0_13] : memref<1x32xf32, #tpu.memory_space<vmem>>, vector<1x32xf32>
      %14 = vector.broadcast %13 : vector<1x32xf32> to vector<16x32xf32>
      %15 = arith.addf %12, %14 : vector<16x32xf32>
      %c0_14 = arith.constant 0 : index
      %c0_15 = arith.constant 0 : index
      %16 = vector.load %arg6[%c0_14, %c0_15] : memref<16x32xf32, #tpu.memory_space<vmem>>, vector<16x32xf32>
      %17 = arith.addf %15, %16 : vector<16x32xf32>
      %cst_16 = arith.constant dense<0.000000e+00> : vector<16xf32>
      %18 = vector.multi_reduction <add>, %17, %cst_16 [1] : vector<16x32xf32> to vector<16xf32>
      %19 = vector.shape_cast %18 : vector<16xf32> to vector<16x1xf32>
      %cst_17 = arith.constant 3.200000e+01 : f32
      %20 = vector.broadcast %cst_17 : f32 to vector<16x1xf32>
      %21 = arith.divf %19, %20 : vector<16x1xf32>
      %22 = vector.broadcast %21 : vector<16x1xf32> to vector<16x32xf32>
      %23 = arith.subf %17, %22 : vector<16x32xf32>
      %24 = arith.mulf %23, %23 : vector<16x32xf32>
      %cst_18 = arith.constant dense<0.000000e+00> : vector<16xf32>
      %25 = vector.multi_reduction <add>, %24, %cst_18 [1] : vector<16x32xf32> to vector<16xf32>
      %26 = vector.shape_cast %25 : vector<16xf32> to vector<16x1xf32>
      %cst_19 = arith.constant 3.200000e+01 : f32
      %27 = vector.broadcast %cst_19 : f32 to vector<16x1xf32>
      %28 = arith.divf %26, %27 : vector<16x1xf32>
      %29 = vector.broadcast %21 : vector<16x1xf32> to vector<16x32xf32>
      %30 = arith.subf %17, %29 : vector<16x32xf32>
      %cst_20 = arith.constant 9.99999996E-13 : f32
      %31 = vector.broadcast %cst_20 : f32 to vector<16x1xf32>
      %32 = arith.addf %28, %31 : vector<16x1xf32>
      %33 = math.rsqrt %32 : vector<16x1xf32>
      %34 = vector.broadcast %33 : vector<16x1xf32> to vector<16x32xf32>
      %35 = arith.mulf %30, %34 : vector<16x32xf32>
      %c0_21 = arith.constant 0 : index
      %c0_22 = arith.constant 0 : index
      %36 = vector.load %arg7[%c0_21, %c0_22] : memref<1x32xf32, #tpu.memory_space<vmem>>, vector<1x32xf32>
      %37 = vector.broadcast %36 : vector<1x32xf32> to vector<16x32xf32>
      %38 = arith.mulf %35, %37 : vector<16x32xf32>
      %c0_23 = arith.constant 0 : index
      %c0_24 = arith.constant 0 : index
      %39 = vector.load %arg8[%c0_23, %c0_24] : memref<1x32xf32, #tpu.memory_space<vmem>>, vector<1x32xf32>
      %40 = vector.broadcast %39 : vector<1x32xf32> to vector<16x32xf32>
      %41 = arith.addf %38, %40 : vector<16x32xf32>
      %c0_25 = arith.constant 0 : index
      %c0_26 = arith.constant 0 : index
      %42 = vector.load %arg9[%c0_25, %c0_26] : memref<16x32xf32, #tpu.memory_space<vmem>>, vector<16x32xf32>
      tpu.vector_store %arg9[%c0_25, %c0_26], %41 {strides = array<i32>} : memref<16x32xf32, #tpu.memory_space<vmem>>, vector<16x32xf32>,
    } else {
    }
    return
  }
  func.func @transform_0(%arg0: i32, %arg1: i32, %arg2: i32) -> (i32, i32) {
    %c0_i32 = arith.constant 0 : i32
    return %arg0, %arg2 : i32, i32
  }
  func.func @transform_1(%arg0: i32, %arg1: i32, %arg2: i32) -> (i32, i32) {
    %c0_i32 = arith.constant 0 : i32
    return %arg2, %arg1 : i32, i32
  }
  func.func @transform_2(%arg0: i32, %arg1: i32, %arg2: i32) -> (i32, i32) {
    %c0_i32 = arith.constant 0 : i32
    %c0_i32_0 = arith.constant 0 : i32
    return %c0_i32, %arg1 : i32, i32
  }
  func.func @transform_3(%arg0: i32, %arg1: i32, %arg2: i32) -> (i32, i32) {
    %c0_i32 = arith.constant 0 : i32
    return %arg0, %arg1 : i32, i32
  }
  func.func @transform_4(%arg0: i32, %arg1: i32, %arg2: i32) -> (i32, i32) {
    %c0_i32 = arith.constant 0 : i32
    %c0_i32_0 = arith.constant 0 : i32
    return %c0_i32, %arg1 : i32, i32
  }
  func.func @transform_5(%arg0: i32, %arg1: i32, %arg2: i32) -> (i32, i32) {
    %c0_i32 = arith.constant 0 : i32
    %c0_i32_0 = arith.constant 0 : i32
    return %c0_i32, %arg1 : i32, i32
  }
  func.func @transform_6(%arg0: i32, %arg1: i32, %arg2: i32) -> (i32, i32) {
    %c0_i32 = arith.constant 0 : i32
    return %arg0, %arg1 : i32, i32
  }
}

</mosaic_0001>

<bundles_post_ra>
// kernel: _lambda_.9
= control target key start
LH: loop header
LB: loop body
LE: loop exit
PB: predicated region body
PF: predicated region fallthrough
CT: control target
= control target key end

     0   :  { %8 = vsyncpa [#allocation4], 0  ;;  %s135_s15 = smov [#allocation3]   ;;  %s136_s17 = smov 128   ;;  %s189_s0 = inlined_call_operand.hbm [shape: f32[16,32], index: 0, kind: input, shape index: {}]   ;;  %s190_s1 = inlined_call_operand.vmem [shape: f32[32,96], index: 1, kind: input, shape index: {}]   ;;  %s191_s2 = inlined_call_operand.vmem [shape: f32[1,96], index: 2, kind: input, shape index: {}]   ;;  %s192_s3 = inlined_call_operand.vmem [shape: f32[16,96], index: 3, kind: output, shape index: {}]  }
   0x1   :  { %s13_s14 = sshll.u32 %s189_s0, 4  ;;  %s15_s16 = sshll.u32 %s135_s15, 4  ;;  %s14_s14 = int_to_ptr.hbm [resolvable:$true] %s13_s14  ;;  %s16_s16 = int_to_ptr.vmem [resolvable:$true] %s15_s16 }
   0x2   :  { %s137_s18 = smov 8  }
   0x3   :  { %21 = dma.hbm_to_vmem [thread:$0]  %s14_s14, 256, %s16_s16, [#allocation4], %s136_s17, %s136_s17, %s137_s18  }
   0x4   :  { %133 = dma.done.wait [#allocation4], 256  }
   0x5   :  { %134 = vsyncadd [#allocation4], 4294967040  ;;  %vm34_vm0 = vcmask 785408   ;;  %v138_v0 = vmov 0.0   ;;  %v44_v1 = vld [vmem:[%s190_s1 + $0x18] sm:$0xff]  ;;  %v43_v2 = vld [vmem:[%s190_s1 + $0x10] sm:$0xff] }
   0x6   :  { %35 = vst.msk [vmem:[#allocation2] sm:$0xff] %vm34_vm0, %v138_v0  ;;  %64 = vmatpush.msra.mxu0 %v44_v1  ;;  %100 = vmatpush.msra.mxu1 %v44_v1  ;;  %v42_v3 = vld [vmem:[%s190_s1 + $0x8] sm:$0xff]  ;;  %v41_v4 = vld [vmem:[%s190_s1] sm:$0xff]  ;;  %v39_v5 = vld [vmem:[#allocation3] sm:$0xff]  ;;  %vm45_vm1 = vcmask 261120  }
   0x7   :  { %36 = vst.msk [vmem:[#allocation2 + $0x8] sm:$0xff] %vm34_vm0, %v138_v0  ;;  %v40_v6 = vld [vmem:[#allocation3 + $0x8] sm:$0xff]  ;;  %v108_v13 = vld [vmem:[%s191_s2] ss:$0 sm:$0xff] }
   0x8   :  { %65 = vmatpush.msra.mxu0 %v43_v2  ;;  %101 = vmatpush.msra.mxu1 %v43_v2 }
   0xa   :  { %66 = vmatpush.msra.mxu0 %v42_v3  ;;  %102 = vmatpush.msra.mxu1 %v42_v3 }
   0xc   :  { %67 = vmatpush.msra.mxu0 %v41_v4  ;;  %103 = vmatpush.msra.mxu1 %v41_v4 }
   0xd   :  { %98 = vmatmul.msk.f32.vlgmr.msra.gmra.mxu0 %vm45_vm1, %v39_v5  ;;  %99 = vmatmul.msk.f32.vlgmr.msra.gmra.mxu1 %vm45_vm1, %v40_v6  ;;  %v37_v7 = vld [vmem:[#allocation2] sm:$0xff] }
   0xe   :  { %v38_v8 = vld [vmem:[#allocation2 + $0x8] sm:$0xff] }
  0x8a   :  { %v69_v9 = vpop.f32.mrf.mxu0  ;;  %v72_v10 = vpop.f32.mrf.mxu1 }
  0x8b   :  { %v75_v11 = vadd.f32 %v69_v9, %v37_v7  ;;  %v76_v12 = vadd.f32 %v72_v10, %v38_v8 }
  0x8d   :  { %78 = vst.msk [vmem:[#allocation2] sm:$0xff] %vm34_vm0, %v75_v11 }
  0x8e   :  { %79 = vst.msk [vmem:[#allocation2 + $0x8] sm:$0xff] %vm34_vm0, %v76_v12 }
  0x94   :  { %v83_v14 = vld [vmem:[#allocation2] sm:$0xff] }
  0x95   :  { %v89_v15 = vadd.f32 %v108_v13, %v83_v14  ;;  %v84_v16 = vld [vmem:[#allocation2 + $0x8] sm:$0xff] }
  0x96   :  { %v90_v17 = vadd.f32 %v108_v13, %v84_v16 }
  0x97   :  { %91 = vst.msk [vmem:[%s192_s3] sm:$0xff] %vm34_vm0, %v89_v15 }
  0x98   :  { %92 = vst.msk [vmem:[%s192_s3 + $0x8] sm:$0xff] %vm34_vm0, %v90_v17 }
  0x99   :  { %97 = vsyncpa [#allocation4], 1 }

// kernel: _lambda_.13
= control target key start
LH: loop header
LB: loop body
LE: loop exit
PB: predicated region body
PF: predicated region fallthrough
CT: control target
= control target key end

     0   :  { %8 = vsyncpa [#allocation4], 0  ;;  %s135_s15 = smov [#allocation3]   ;;  %s136_s17 = smov 128   ;;  %s189_s0 = inlined_call_operand.hbm [shape: f32[16,32], index: 0, kind: input, shape index: {}]   ;;  %s190_s1 = inlined_call_operand.vmem [shape: f32[32,64], index: 1, kind: input, shape index: {}]   ;;  %s191_s2 = inlined_call_operand.vmem [shape: f32[1,64], index: 2, kind: input, shape index: {}]   ;;  %s192_s3 = inlined_call_operand.vmem [shape: f32[16,64], index: 3, kind: output, shape index: {}]  }
   0x1   :  { %s13_s14 = sshll.u32 %s189_s0, 4  ;;  %s15_s16 = sshll.u32 %s135_s15, 4  ;;  %s14_s14 = int_to_ptr.hbm [resolvable:$true] %s13_s14  ;;  %s16_s16 = int_to_ptr.vmem [resolvable:$true] %s15_s16 }
   0x2   :  { %s137_s18 = smov 8  }
   0x3   :  { %21 = dma.hbm_to_vmem [thread:$0]  %s14_s14, 256, %s16_s16, [#allocation4], %s136_s17, %s136_s17, %s137_s18  }
   0x4   :  { %133 = dma.done.wait [#allocation4], 256  }
   0x5   :  { %134 = vsyncadd [#allocation4], 4294967040  ;;  %vm34_vm0 = vcmask 523264   ;;  %v138_v0 = vmov 0.0   ;;  %v44_v1 = vld [vmem:[%s190_s1 + $0x18] sm:$0xff]  ;;  %v43_v2 = vld [vmem:[%s190_s1 + $0x10] sm:$0xff] }
   0x6   :  { %35 = vst.msk [vmem:[#allocation2] sm:$0xff] %vm34_vm0, %v138_v0  ;;  %64 = vmatpush.msra.mxu0 %v44_v1  ;;  %100 = vmatpush.msra.mxu1 %v44_v1  ;;  %v42_v3 = vld [vmem:[%s190_s1 + $0x8] sm:$0xff]  ;;  %v41_v4 = vld [vmem:[%s190_s1] sm:$0xff]  ;;  %v39_v5 = vld [vmem:[#allocation3] sm:$0xff]  ;;  %vm45_vm1 = vcmask 261120  }
   0x7   :  { %36 = vst.msk [vmem:[#allocation2 + $0x8] sm:$0xff] %vm34_vm0, %v138_v0  ;;  %v40_v6 = vld [vmem:[#allocation3 + $0x8] sm:$0xff]  ;;  %v108_v13 = vld [vmem:[%s191_s2] ss:$0 sm:$0xff] }
   0x8   :  { %65 = vmatpush.msra.mxu0 %v43_v2  ;;  %101 = vmatpush.msra.mxu1 %v43_v2 }
   0xa   :  { %66 = vmatpush.msra.mxu0 %v42_v3  ;;  %102 = vmatpush.msra.mxu1 %v42_v3 }
   0xc   :  { %67 = vmatpush.msra.mxu0 %v41_v4  ;;  %103 = vmatpush.msra.mxu1 %v41_v4 }
   0xd   :  { %98 = vmatmul.msk.f32.vlgmr.msra.gmra.mxu0 %vm45_vm1, %v39_v5  ;;  %99 = vmatmul.msk.f32.vlgmr.msra.gmra.mxu1 %vm45_vm1, %v40_v6  ;;  %v37_v7 = vld [vmem:[#allocation2] sm:$0xff] }
   0xe   :  { %v38_v8 = vld [vmem:[#allocation2 + $0x8] sm:$0xff] }
  0x8a   :  { %v69_v9 = vpop.f32.mrf.mxu0  ;;  %v72_v10 = vpop.f32.mrf.mxu1 }
  0x8b   :  { %v75_v11 = vadd.f32 %v69_v9, %v37_v7  ;;  %v76_v12 = vadd.f32 %v72_v10, %v38_v8 }
  0x8d   :  { %78 = vst.msk [vmem:[#allocation2] sm:$0xff] %vm34_vm0, %v75_v11 }
  0x8e   :  { %79 = vst.msk [vmem:[#allocation2 + $0x8] sm:$0xff] %vm34_vm0, %v76_v12 }
  0x94   :  { %v83_v14 = vld [vmem:[#allocation2] sm:$0xff] }
  0x95   :  { %v89_v15 = vadd.f32 %v108_v13, %v83_v14  ;;  %v84_v16 = vld [vmem:[#allocation2 + $0x8] sm:$0xff] }
  0x96   :  { %v90_v17 = vadd.f32 %v108_v13, %v84_v16 }
  0x97   :  { %91 = vst.msk [vmem:[%s192_s3] sm:$0xff] %vm34_vm0, %v89_v15 }
  0x98   :  { %92 = vst.msk [vmem:[%s192_s3 + $0x8] sm:$0xff] %vm34_vm0, %v90_v17 }
  0x99   :  { %97 = vsyncpa [#allocation4], 1 }

// kernel: _lambda_.11
= control target key start
LH: loop header
LB: loop body
LE: loop exit
PB: predicated region body
PF: predicated region fallthrough
CT: control target
= control target key end

     0   :  { %11 = vsyncpa [#allocation4], 0  ;;  %s219_s24 = smov [#allocation3]   ;;  %s220_s26 = smov 128   ;;  %s307_s0 = inlined_call_operand.vmem [shape: f32[16,32], index: 0, kind: input, shape index: {}]   ;;  %s308_s1 = inlined_call_operand.vmem [shape: f32[32,32], index: 1, kind: input, shape index: {}]   ;;  %s309_s2 = inlined_call_operand.vmem [shape: f32[1,32], index: 2, kind: input, shape index: {}]   ;;  %s310_s3 = inlined_call_operand.hbm [shape: f32[16,32], index: 3, kind: input, shape index: {}]   ;;  %s311_s4 = inlined_call_operand.vmem [shape: f32[1,32], index: 4, kind: input, shape index: {}]   ;;  %s312_s5 = inlined_call_operand.vmem [shape: f32[1,32], index: 5, kind: input, shape index: {}]   ;;  %s313_s6 = inlined_call_operand.vmem [shape: f32[16,32], index: 6, kind: output, shape index: {}]  }
   0x1   :  { %s22_s23 = sshll.u32 %s310_s3, 4  ;;  %s24_s25 = sshll.u32 %s219_s24, 4  ;;  %s23_s23 = int_to_ptr.hbm [resolvable:$true] %s22_s23  ;;  %s25_s25 = int_to_ptr.vmem [resolvable:$true] %s24_s25 }
   0x2   :  { %s221_s27 = smov 8  }
   0x3   :  { %30 = dma.hbm_to_vmem [thread:$0]  %s23_s23, 256, %s25_s25, [#allocation4], %s220_s26, %s220_s26, %s221_s27  }
   0x4   :  { %217 = dma.done.wait [#allocation4], 256  }
   0x5   :  { %218 = vsyncadd [#allocation4], 4294967040  ;;  %vm43_vm0 = vcmask 261120   ;;  %v222_v0 = vmov 0.0   ;;  %v53_v1 = vld [vmem:[%s308_s1 + $0x18] sm:$0xff]  ;;  %v52_v2 = vld [vmem:[%s308_s1 + $0x10] sm:$0xff] }
   0x6   :  { %44 = vst.msk [vmem:[#allocation2] sm:$0xff] %vm43_vm0, %v222_v0  ;;  %73 = vmatpush.msra.mxu0 %v53_v1  ;;  %175 = vmatpush.msra.mxu1 %v53_v1  ;;  %v51_v3 = vld [vmem:[%s308_s1 + $0x8] sm:$0xff]  ;;  %v50_v4 = vld [vmem:[%s308_s1] sm:$0xff]  ;;  %v99_v15 = vld [vmem:[#allocation3] sm:$0xff]  ;;  %v223_v24 = vmov 32.0  }
   0x7   :  { %45 = vst.msk [vmem:[#allocation2 + $0x8] sm:$0xff] %vm43_vm0, %v222_v0  ;;  %v48_v5 = vld [vmem:[%s307_s0] sm:$0xff]  ;;  %v49_v6 = vld [vmem:[%s307_s0 + $0x8] sm:$0xff]  ;;  %v100_v20 = vld [vmem:[#allocation3 + $0x8] sm:$0xff]  ;;  %187 = vrcp.f32 %v223_v24 }
   0x8   :  { %74 = vmatpush.msra.mxu0 %v52_v2  ;;  %176 = vmatpush.msra.mxu1 %v52_v2  ;;  %v184_v13 = vld [vmem:[%s309_s2] ss:$0 sm:$0xff] }
   0x9   :  { %v185_v55 = vld [vmem:[%s311_s4] ss:$0 sm:$0xff] }
   0xa   :  { %75 = vmatpush.msra.mxu0 %v51_v3  ;;  %177 = vmatpush.msra.mxu1 %v51_v3  ;;  %v186_v58 = vld [vmem:[%s312_s5] ss:$0 sm:$0xff] }
   0xc   :  { %76 = vmatpush.msra.mxu0 %v50_v4  ;;  %178 = vmatpush.msra.mxu1 %v50_v4 }
   0xd   :  { %173 = vmatmul.msk.f32.vlgmr.msra.gmra.mxu0 %vm43_vm0, %v48_v5  ;;  %174 = vmatmul.msk.f32.vlgmr.msra.gmra.mxu1 %vm43_vm0, %v49_v6  ;;  %v46_v7 = vld [vmem:[#allocation2] sm:$0xff]  ;;  %v188_v25 = vpop.eup %187 }
   0xe   :  { %v47_v8 = vld [vmem:[#allocation2 + $0x8] sm:$0xff]  ;;  %v110_v26 = vmul.f32 32.0, %v188_v25  ;;  %vm114_vm1 = vweird.f32 %v188_v25 }
  0x10   :  { %v111_v27 = vsub.f32 1.0, %v110_v26 }
  0x12   :  { %v112_v28 = vmul.f32 %v188_v25, %v111_v27 }
  0x14   :  { %v113_v29 = vadd.f32 %v188_v25, %v112_v28 }
  0x16   :  { %v115_v30 = vsel %vm114_vm1, %v188_v25, %v113_v29 }
  0x8a   :  { %v78_v9 = vpop.f32.mrf.mxu0  ;;  %v81_v10 = vpop.f32.mrf.mxu1 }
  0x8b   :  { %v84_v11 = vadd.f32 %v78_v9, %v46_v7  ;;  %v85_v12 = vadd.f32 %v81_v10, %v47_v8 }
  0x8d   :  { %86 = vst.msk [vmem:[#allocation2] sm:$0xff] %vm43_vm0, %v84_v11 }
  0x8e   :  { %87 = vst.msk [vmem:[#allocation2 + $0x8] sm:$0xff] %vm43_vm0, %v85_v12 }
  0x94   :  { %v91_v14 = vld [vmem:[#allocation2] sm:$0xff] }
  0x95   :  { %v97_v16 = vadd.f32 %v184_v13, %v91_v14  ;;  %v92_v17 = vld [vmem:[#allocation2 + $0x8] sm:$0xff] }
  0x96   :  { %v98_v19 = vadd.f32 %v184_v13, %v92_v17 }
  0x97   :  { %v101_v18 = vadd.f32 %v99_v15, %v97_v16 }
  0x98   :  { %v102_v22 = vadd.f32 %v100_v20, %v98_v19 }
  0x99   :  { %v103_v21 = vsel %vm43_vm0, %v101_v18, 0.0 }
  0x9a   :  { %104 = vadd.xlane.f32.xlu0 %v103_v21  ;;  %v106_v23 = vsel %vm43_vm0, %v102_v22, 0.0 }
  0xa2   :  { %107 = vadd.xlane.f32.xlu0 %v106_v23 }
 0x10d   :  { %v105_v31 = vpop.xlane.xlu0 %104 }
 0x10e   :  { %v116_v32 = vmul.f32 %v115_v30, %v105_v31 }
 0x110   :  { %v118_v33 = vsub.f32 %v101_v18, %v116_v32 }
 0x112   :  { %v120_v34 = vmul.f32 %v118_v33, %v118_v33 }
 0x114   :  { %v122_v35 = vsel %vm43_vm0, %v120_v34, 0.0 }
 0x115   :  { %123 = vadd.xlane.f32.xlu1 %v122_v35  ;;  %v108_v36 = vpop.xlane.xlu0 %107 }
 0x116   :  { %v117_v37 = vmul.f32 %v115_v30, %v108_v36 }
 0x118   :  { %v119_v38 = vsub.f32 %v102_v22, %v117_v37 }
 0x11a   :  { %v121_v39 = vmul.f32 %v119_v38, %v119_v38 }
 0x11c   :  { %v125_v40 = vsel %vm43_vm0, %v121_v39, 0.0 }
 0x11d   :  { %126 = vadd.xlane.f32.xlu1 %v125_v40 }
 0x188   :  { %v124_v41 = vpop.xlane.xlu1 %123 }
 0x189   :  { %v128_v42 = vmul.f32 %v124_v41, %v115_v30 }
 0x18b   :  { %v130_v43 = vadd.f32 1e-12, %v128_v42 }
 0x18d   :  { %189 = vrsqrt.f32 %v130_v43  ;;  %vm138_vm3 = vweird.f32 %v130_v43 }
 0x190   :  { %v127_v44 = vpop.xlane.xlu1 %126 }
 0x191   :  { %v129_v45 = vmul.f32 %v127_v44, %v115_v30 }
 0x193   :  { %v190_v46 = vpop.eup %189  ;;  %v131_v47 = vadd.f32 1e-12, %v129_v45 }
 0x194   :  { %v133_v48 = vmul.f32 %v190_v46, %v130_v43  ;;  %vm139_vm2 = vweird.f32 %v190_v46 }
 0x195   :  { %191 = vrsqrt.f32 %v131_v47  ;;  %vm140_vm4 = vmor %vm138_vm3, %vm139_vm2  ;;  %vm148_vm6 = vweird.f32 %v131_v47 }
 0x196   :  { %v134_v49 = vmul.f32 %v190_v46, %v133_v48 }
 0x198   :  { %v135_v50 = vmul.f32 0.5, %v134_v49 }
 0x19a   :  { %v136_v51 = vsub.f32 1.5, %v135_v50 }
 0x19b   :  { %v192_v52 = vpop.eup %191 }
 0x19c   :  { %v137_v53 = vmul.f32 %v190_v46, %v136_v51  ;;  %v143_v54 = vmul.f32 %v192_v52, %v131_v47  ;;  %vm149_vm5 = vweird.f32 %v192_v52 }
 0x19d   :  { %vm150_vm7 = vmor %vm148_vm6, %vm149_vm5 }
 0x19e   :  { %v141_v56 = vsel %vm140_vm4, %v190_v46, %v137_v53  ;;  %v144_v57 = vmul.f32 %v192_v52, %v143_v54 }
 0x19f   :  { %v152_v59 = vmul.f32 %v141_v56, %v118_v33 }
 0x1a0   :  { %v145_v60 = vmul.f32 0.5, %v144_v57 }
 0x1a1   :  { %v158_v61 = vmul.f32 %v185_v55, %v152_v59 }
 0x1a2   :  { %v146_v62 = vsub.f32 1.5, %v145_v60 }
 0x1a3   :  { %v164_v63 = vadd.f32 %v186_v58, %v158_v61 }
 0x1a4   :  { %v147_v0 = vmul.f32 %v192_v52, %v146_v62 }
 0x1a5   :  { %166 = vst.msk [vmem:[%s313_s6] sm:$0xff] %vm43_vm0, %v164_v63 }
 0x1a6   :  { %v151_v1 = vsel %vm150_vm7, %v192_v52, %v147_v0 }
 0x1a7   :  { %v153_v2 = vmul.f32 %v151_v1, %v119_v38 }
 0x1a9   :  { %v159_v3 = vmul.f32 %v185_v55, %v153_v2 }
 0x1ab   :  { %v165_v4 = vadd.f32 %v186_v58, %v159_v3 }
 0x1ad   :  { %167 = vst.msk [vmem:[%s313_s6 + $0x8] sm:$0xff] %vm43_vm0, %v165_v4 }
 0x1ae   :  { %172 = vsyncpa [#allocation4], 1 }

// kernel: _lambda_.10
= control target key start
LH: loop header
LB: loop body
LE: loop exit
PB: predicated region body
PF: predicated region fallthrough
CT: control target
= control target key end

     0   :  { %s538_s6 = smov 0   ;;  %s597_s0 = inlined_call_operand.vmem [shape: f32[2,8,96], index: 0, kind: input, shape index: {}]   ;;  %s598_s1 = inlined_call_operand.vmem [shape: f32[2,8,32], index: 1, kind: output, shape index: {}]  }
   0x1 LB: > { %s447_s7 = sadd.s32 4294967295, %s512_s6   ;;  %p451_p0 = scmp.ge.s32.totalorder %s512_s6, 1  ;;  %s512_s6 = sphi %s538_s6, %s11_s6  }
   0x2   : > { %p86_p1 = scmp.lt.s32.totalorder %s512_s6, 3 }
   0x4   : > { %p87_p2 = pnand %p451_p0, %p86_p1 }
   0x5   : > { %p104_p3 = scmp.lt.s32.totalorder (!%p87_p2), %s447_s7, 1  ;;  %s514_s12 = smov (!%p87_p2), 96  }
   0x6   : > { %90 = sbr.rel (%p87_p2) target bundleno = 1170 (0x492), region = 24  ;;  %s515_s13 = smov (!%p87_p2), 88  }
   0x7   : > { %s516_s14 = smov (!%p87_p2), 120   ;;  %s517_s15 = smov (!%p87_p2), 64  }
   0x8   : > { %s518_s16 = smov (!%p87_p2), 80   ;;  %s519_s17 = smov (!%p87_p2), 72  }
   0x9   : > { %s520_s18 = smov (!%p87_p2), 112   ;;  %s521_s19 = smov (!%p87_p2), 104  }
   0xa   : > { %s522_s20 = smov (!%p87_p2), 48   ;;  %s523_s21 = smov (!%p87_p2), 56  }
   0xb   : > { %s600_s7 = smov (!%p104_p3, %s447_s7), 1  ;;  %vm117_vm0 = vcmask 64512   ;;  %s524_s22 = smov 40   ;;  %vm388_vm1 = vcmask 130048   ;;  %vm390_vm2 = vcmask 195584   ;;  %vm392_vm3 = vcmask 261120  }
   0xc   : > { %s452_s8 = sshll.u32 %s600_s7, 3  ;;  %s525_s23 = smov 24  }
   0xd   : > { %s107_s11 = scalar_lea.vmem %s597_s0, %s452_s8  ;;  %s526_s24 = smov 8  }
   0xe   : > { %v554_v0 = vld [vmem:[%s107_s11] sm:$0xff]  ;;  %s527_s25 = smov 16   ;;  %s111_s28 = scalar_lea.vmem %s598_s1, %s452_s8 }
   0xf   : > { %115 = vrot.lane.b32.xlu0 %v554_v0, %s514_s12  ;;  %182 = vrot.lane.b32.xlu1 %v554_v0, %s515_s13  ;;  %v113_v2 = vmul.f32 0.35355338, %v554_v0 }
  0x11   : > { %180 = vrot.lane.b32.xlu2 %v113_v2, %s516_s14 }
  0x19   : > { %154 = vrot.lane.b32.xlu2 %v554_v0, %s517_s15 }
  0x21   : > { %247 = vrot.lane.b32.xlu2 %v554_v0, %s518_s16 }
  0x29   : > { %312 = vrot.lane.b32.xlu2 %v554_v0, %s519_s17 }
  0x31   : > { %245 = vrot.lane.b32.xlu2 %v113_v2, %s520_s18 }
  0x6b   : > { %v181_v4 = vpop.permute.xlu2 %180 }
  0x73   : > { %v155_v10 = vpop.permute.xlu2 %154 }
  0x74   : > { %175 = vmatpush.msra.mxu1 %v155_v10 }
  0x7b   : > { %v248_v14 = vpop.permute.xlu2 %247 }
  0x7c   : > { %460 = vmatpush.xpose.msk.msrb.mxu1 %vm117_vm0, %v248_v14 }
  0x81   : > { %v116_v1 = vpop.permute.xlu0 %115  ;;  %v183_v3 = vpop.permute.xlu1 %182 }
  0x82   : > { %454 = vmatpush.xpose.msk.msra.mxu0 %vm117_vm0, %v116_v1  ;;  %457 = vmatpush.xpose.msk.msra.mxu2 %vm117_vm0, %v183_v3 }
  0x83   : > { %v313_v16 = vpop.permute.xlu2 %312 }
  0x85   : > { %455 = vmatmul.msk.f32.vlgmr.msra.gmra.mxu0 %vm117_vm0, %v113_v2  ;;  %458 = vmatmul.msk.f32.vlgmr.msra.gmra.mxu2 %vm117_vm0, %v181_v4 }
  0x86   : > { %463 = vmatpush.xpose.msk.msrb.mxu0 %vm117_vm0, %v313_v16 }
  0x8b   : > { %v246_v20 = vpop.permute.xlu2 %245 }
 0x102   : > { %v140_v5 = vpop.f32.mrf.mxu0 }
 0x103   : > { %v143_v6 = vsel %vm117_vm0, %v140_v5, -inf }
 0x104   : > { %144 = vmax.xlane.f32.xlu0 %v143_v6 }
 0x108   : > { %v205_v13 = vpop.f32.mrf.mxu2 }
 0x109   : > { %v208_v15 = vsel %vm117_vm0, %v205_v13, -inf }
 0x10a   : > { %209 = vmax.xlane.f32.xlu2 %v208_v15 }
 0x177   : > { %v145_v7 = vpop.xlane.xlu0 %144 }
 0x178   : > { %v146_v8 = vsub.f32 %v140_v5, %v145_v7 }
 0x17a   : > { %v147_v9 = vmul.f32 1.442695, %v146_v8 }
 0x17c   : > { %490 = vpow2.f32 %v147_v9 }
 0x17d   : > { %v210_v23 = vpop.xlane.xlu2 %209 }
 0x17e   : > { %v211_v24 = vsub.f32 %v205_v13, %v210_v23 }
 0x180   : > { %v212_v27 = vmul.f32 1.442695, %v211_v24 }
 0x182   : > { %v491_v11 = vpop.eup %490 }
 0x183   : > { %v149_v12 = vsel %vm117_vm0, %v491_v11, 0.0 }
 0x184   : > { %150 = vadd.xlane.f32.xlu1 %v149_v12 }
 0x19d   : > { %310 = vrot.lane.b32.xlu1 %v113_v2, %s521_s19 }
 0x1f7   : > { %v151_v17 = vpop.xlane.xlu1 %150 }
 0x1f8   : > { %492 = vrcp.f32 %v151_v17 }
 0x1f9   : > { %494 = vpow2.f32 %v212_v27 }
 0x1fe   : > { %v493_v18 = vpop.eup %492 }
 0x1ff   : > { %v153_v19 = vmul.f32 %v493_v18, %v491_v11  ;;  %v495_v30 = vpop.eup %494 }
 0x200   : > { %v214_v31 = vsel %vm117_vm0, %v495_v30, 0.0 }
 0x201   : > { %456 = vmatmul.msk.f32.vlgmr.msra.gmra.mxu1 %vm117_vm0, %v153_v19 }
 0x209   : > { %461 = vmatmul.msk.f32.vlgmr.msrb.gmra.mxu1 %vm117_vm0, %v246_v20 }
 0x20f   : > { %v311_v21 = vpop.permute.xlu1 %310 }
 0x210   : > { %464 = vmatmul.msk.f32.vlgmr.msrb.gmra.mxu0 %vm117_vm0, %v311_v21 }
 0x27e   : > { %v574_v22 = vpop.f32.mrf.mxu1 }
 0x286   : > { %v270_v25 = vpop.f32.mrf.mxu1 }
 0x287   : > { %v273_v26 = vsel %vm117_vm0, %v270_v25, -inf }
 0x288   : > { %274 = vmax.xlane.f32.xlu1 %v273_v26 }
 0x28d   : > { %v335_v28 = vpop.f32.mrf.mxu0 }
 0x28e   : > { %v338_v29 = vsel %vm117_vm0, %v335_v28, -inf }
 0x28f   : > { %339 = vmax.xlane.f32.xlu0 %v338_v29 }
 0x297   : > { %215 = vadd.xlane.f32.xlu0 %v214_v31 }
 0x2a1   : > { %284 = vrot.lane.b32.xlu1 %v554_v0, %s522_s20 }
 0x2fb   : > { %v275_v32 = vpop.xlane.xlu1 %274 }
 0x2fc   : > { %v276_v33 = vsub.f32 %v270_v25, %v275_v32 }
 0x2fe   : > { %v277_v34 = vmul.f32 1.442695, %v276_v33 }
 0x300   : > { %496 = vpow2.f32 %v277_v34 }
 0x302   : > { %v340_v35 = vpop.xlane.xlu0 %339 }
 0x303   : > { %v341_v36 = vsub.f32 %v335_v28, %v340_v35 }
 0x305   : > { %v342_v37 = vmul.f32 1.442695, %v341_v36 }
 0x306   : > { %v497_v38 = vpop.eup %496 }
 0x307   : > { %498 = vpow2.f32 %v342_v37  ;;  %v279_v39 = vsel %vm117_vm0, %v497_v38, 0.0 }
 0x308   : > { %280 = vadd.xlane.f32.xlu0 %v279_v39 }
 0x30a   : > { %v216_v42 = vpop.xlane.xlu0 %215 }
 0x30d   : > { %v499_v40 = vpop.eup %498 }
 0x30e   : > { %v344_v41 = vsel %vm117_vm0, %v499_v40, 0.0 }
 0x30f   : > { %345 = vadd.xlane.f32.xlu2 %v344_v41 }
 0x313   : > { %v285_v50 = vpop.permute.xlu1 %284 }
 0x31c   : > { %219 = vrot.lane.b32.xlu0 %v554_v0, %s523_s21 }
 0x327   : > { %349 = vrot.lane.b32.xlu2 %v554_v0, %s524_s22 }
 0x37b   : > { %v281_v44 = vpop.xlane.xlu0 %280 }
 0x382   : > { %v346_v43 = vpop.xlane.xlu2 %345 }
 0x383   : > { %500 = vrcp.f32 %v346_v43 }
 0x384   : > { %502 = vrcp.f32 %v216_v42 }
 0x385   : > { %504 = vrcp.f32 %v281_v44 }
 0x389   : > { %v501_v45 = vpop.eup %500 }
 0x38a   : > { %v350_v46 = vpop.permute.xlu2 %349  ;;  %v348_v47 = vmul.f32 %v501_v45, %v499_v40  ;;  %v503_v48 = vpop.eup %502 }
 0x38b   : > { %370 = vmatpush.msrb.mxu2 %v350_v46  ;;  %v218_v51 = vmul.f32 %v503_v48, %v495_v30  ;;  %v505_v52 = vpop.eup %504 }
 0x38c   : > { %465 = vmatmul.msk.f32.vlgmr.msrb.gmra.mxu2 %vm117_vm0, %v348_v47  ;;  %v283_v53 = vmul.f32 %v505_v52, %v497_v38 }
 0x38e   : > { %v220_v49 = vpop.permute.xlu0 %219 }
 0x38f   : > { %240 = vmatpush.msra.mxu3 %v220_v49 }
 0x390   : > { %459 = vmatmul.msk.f32.vlgmr.msra.gmra.mxu3 %vm117_vm0, %v218_v51 }
 0x391   : > { %305 = vmatpush.msrb.mxu3 %v285_v50 }
 0x398   : > { %462 = vmatmul.msk.f32.vlgmr.msrb.gmra.mxu3 %vm117_vm0, %v283_v53 }
 0x40f   : > { %v372_v54 = vpop.f32.mrf.mxu2 }
 0x410   : > { %384 = vrot.lane.b32.xlu1 %v372_v54, %s525_s23 }
 0x413   : > { %v242_v55 = vpop.f32.mrf.mxu3 }
 0x414   : > { %376 = vrot.lane.b32.xlu0 %v242_v55, %s526_s24 }
 0x41b   : > { %v307_v56 = vpop.f32.mrf.mxu3 }
 0x41c   : > { %380 = vrot.lane.b32.xlu0 %v307_v56, %s527_s25 }
 0x482   : > { %v385_v60 = vpop.permute.xlu1 %384 }
 0x486   : > { %v377_v57 = vpop.permute.xlu0 %376 }
 0x487   : > { %v387_v58 = vsel %vm117_vm0, %v574_v22, %v377_v57 }
 0x48e   : > { %v381_v59 = vpop.permute.xlu0 %380 }
 0x48f   : > { %v389_v61 = vsel %vm388_vm1, %v387_v58, %v381_v59 }
 0x490   : > { %v391_v62 = vsel %vm390_vm2, %v389_v61, %v385_v60 }
 0x491   : > { %393 = vst.msk [vmem:[%s111_s28] sm:$0xff] %vm392_vm3, %v391_v62 }
 0x492 PF: > { %s11_s6 = sadd.s32 1, %s512_s6  }
 0x493   : > { %p8_p4 = scmp.ge.s32.totalorder %s11_s6, 4  }
 0x495   :  { %10 = sbr.rel (!%p8_p4) target bundleno = 1 (0x1), region = 54 }

// kernel: _lambda_.12
= control target key start
LH: loop header
LB: loop body
LE: loop exit
PB: predicated region body
PF: predicated region fallthrough
CT: control target
= control target key end

     0   :  { %vm18_vm0 = vcmask 261120   ;;  %v88_v2 = vmov 0.0   ;;  %s144_s1 = inlined_call_operand.vmem [shape: f32[32,32], index: 1, kind: input, shape index: {}]   ;;  %s145_s2 = inlined_call_operand.vmem [shape: f32[1,32], index: 2, kind: input, shape index: {}]   ;;  %s146_s0 = inlined_call_operand.vmem [shape: f32[16,32], index: 0, kind: input, shape index: {}]   ;;  %s147_s3 = inlined_call_operand.vmem [shape: f32[16,32], index: 3, kind: output, shape index: {}]  }
   0x1   :  { %v28_v0 = vld [vmem:[%s144_s1 + $0x18] sm:$0xff]  ;;  %v27_v1 = vld [vmem:[%s144_s1 + $0x10] sm:$0xff]  ;;  %19 = vst.msk [vmem:[#allocation2] sm:$0xff] %vm18_vm0, %v88_v2  ;;  %v26_v3 = vld [vmem:[%s144_s1 + $0x8] sm:$0xff] }
   0x2   :  { %48 = vmatpush.msra.mxu0 %v28_v0  ;;  %82 = vmatpush.msra.mxu1 %v28_v0  ;;  %20 = vst.msk [vmem:[#allocation2 + $0x8] sm:$0xff] %vm18_vm0, %v88_v2  ;;  %v25_v4 = vld [vmem:[%s144_s1] sm:$0xff]  ;;  %v24_v6 = vld [vmem:[%s146_s0 + $0x8] sm:$0xff] }
   0x3   :  { %v23_v5 = vld [vmem:[%s146_s0] sm:$0xff] }
   0x4   :  { %49 = vmatpush.msra.mxu0 %v27_v1  ;;  %83 = vmatpush.msra.mxu1 %v27_v1  ;;  %v87_v13 = vld [vmem:[%s145_s2] ss:$0 sm:$0xff] }
   0x6   :  { %50 = vmatpush.msra.mxu0 %v26_v3  ;;  %84 = vmatpush.msra.mxu1 %v26_v3 }
   0x8   :  { %51 = vmatpush.msra.mxu0 %v25_v4  ;;  %85 = vmatpush.msra.mxu1 %v25_v4  ;;  %v21_v7 = vld [vmem:[#allocation2] sm:$0xff] }
   0x9   :  { %80 = vmatmul.msk.f32.vlgmr.msra.gmra.mxu0 %vm18_vm0, %v23_v5  ;;  %81 = vmatmul.msk.f32.vlgmr.msra.gmra.mxu1 %vm18_vm0, %v24_v6  ;;  %v22_v8 = vld [vmem:[#allocation2 + $0x8] sm:$0xff] }
  0x86   :  { %v53_v9 = vpop.f32.mrf.mxu0  ;;  %v56_v10 = vpop.f32.mrf.mxu1 }
  0x87   :  { %v59_v11 = vadd.f32 %v53_v9, %v21_v7  ;;  %v60_v12 = vadd.f32 %v56_v10, %v22_v8 }
  0x89   :  { %61 = vst.msk [vmem:[#allocation2] sm:$0xff] %vm18_vm0, %v59_v11 }
  0x8a   :  { %62 = vst.msk [vmem:[#allocation2 + $0x8] sm:$0xff] %vm18_vm0, %v60_v12 }
  0x90   :  { %v66_v14 = vld [vmem:[#allocation2] sm:$0xff] }
  0x91   :  { %v72_v15 = vadd.f32 %v87_v13, %v66_v14  ;;  %v67_v16 = vld [vmem:[#allocation2 + $0x8] sm:$0xff] }
  0x92   :  { %v73_v17 = vadd.f32 %v87_v13, %v67_v16 }
  0x93   :  { %74 = vst.msk [vmem:[%s147_s3] sm:$0xff] %vm18_vm0, %v72_v15 }
  0x94   :  { %75 = vst.msk [vmem:[%s147_s3 + $0x8] sm:$0xff] %vm18_vm0, %v73_v17 }

// kernel: _lambda_.14
= control target key start
LH: loop header
LB: loop body
LE: loop exit
PB: predicated region body
PF: predicated region fallthrough
CT: control target
= control target key end

     0   :  { %s591_s9 = smov 0   ;;  %s650_s0 = inlined_call_operand.vmem [shape: f32[2,8,32], index: 0, kind: input, shape index: {}]   ;;  %s651_s1 = inlined_call_operand.vmem [shape: f32[2,8,64], index: 1, kind: input, shape index: {}]   ;;  %s652_s2 = inlined_call_operand.vmem [shape: f32[2,8,32], index: 2, kind: output, shape index: {}]  }
   0x1 LB: > { %s502_s10 = sadd.s32 4294967295, %s564_s9   ;;  %p506_p0 = scmp.ge.s32.totalorder %s564_s9, 1  ;;  %s564_s9 = sphi %s591_s9, %s12_s9  }
   0x2   : > { %p120_p1 = scmp.lt.s32.totalorder %s564_s9, 3 }
   0x4   : > { %p121_p2 = pnand %p506_p0, %p120_p1 }
   0x5   : > { %p144_p3 = scmp.lt.s32.totalorder (!%p121_p2), %s502_s10, 1  ;;  %s566_s18 = smov (!%p121_p2), 120  }
   0x6   : > { %124 = sbr.rel (%p121_p2) target bundleno = 1049 (0x419), region = 28  ;;  %s567_s19 = smov (!%p121_p2), 112  }
   0x7   : > { %s568_s20 = smov (!%p121_p2), 96   ;;  %s569_s21 = smov (!%p121_p2), 104  }
   0x8   : > { %s570_s22 = smov (!%p121_p2), 80   ;;  %s571_s23 = smov (!%p121_p2), 88  }
   0x9   : > { %s572_s24 = smov (!%p121_p2), 72   ;;  %s573_s25 = smov (!%p121_p2), 8  }
   0xa   : > { %s574_s26 = smov (!%p121_p2), 16   ;;  %s575_s27 = smov (!%p121_p2), 24  }
   0xb   : > { %s654_s10 = smov (!%p144_p3, %s502_s10), 1  ;;  %vm159_vm0 = vcmask 64512   ;;  %vm431_vm1 = vcmask 130048   ;;  %vm433_vm2 = vcmask 195584   ;;  %vm435_vm3 = vcmask 261120  }
   0xc   : > { %s599_s11 = sshll.u32 %s654_s10, 3 }
   0xd   : > { %s151_s14 = scalar_lea.vmem %s651_s1, %s599_s11  ;;  %s147_s17 = scalar_lea.vmem %s650_s0, %s599_s11 }
   0xe   : > { %v609_v0 = vld [vmem:[%s151_s14] sm:$0xff]  ;;  %s155_s30 = scalar_lea.vmem %s652_s2, %s599_s11 }
   0xf   : > { %v156_v1 = vld [vmem:[%s147_s17] sm:$0xff]  ;;  %510 = vmatpush.xpose.msk.msra.mxu0 %vm159_vm0, %v609_v0  ;;  %225 = vrot.lane.b32.xlu1 %v609_v0, %s566_s18 }
  0x10   : > { %v158_v2 = vmul.f32 0.35355338, %v156_v1  ;;  %197 = vrot.lane.b32.xlu2 %v609_v0, %s568_s20 }
  0x12   : > { %511 = vmatmul.msk.f32.vlgmr.msra.gmra.mxu0 %vm159_vm0, %v158_v2 }
  0x17   : > { %223 = vrot.lane.b32.xlu1 %v158_v2, %s566_s18 }
  0x18   : > { %290 = vrot.lane.b32.xlu2 %v609_v0, %s567_s19 }
  0x1f   : > { %288 = vrot.lane.b32.xlu1 %v158_v2, %s567_s19 }
  0x20   : > { %353 = vrot.lane.b32.xlu2 %v158_v2, %s569_s21 }
  0x6a   : > { %v198_v12 = vpop.permute.xlu2 %197 }
  0x6b   : > { %218 = vmatpush.msra.mxu1 %v198_v12 }
  0x72   : > { %v291_v13 = vpop.permute.xlu2 %290 }
  0x73   : > { %516 = vmatpush.xpose.msk.msrb.mxu1 %vm159_vm0, %v291_v13 }
  0x7a   : > { %v354_v21 = vpop.permute.xlu2 %353 }
  0x81   : > { %v226_v5 = vpop.permute.xlu1 %225 }
  0x82   : > { %513 = vmatpush.xpose.msk.msra.mxu2 %vm159_vm0, %v226_v5 }
  0x89   : > { %v224_v6 = vpop.permute.xlu1 %223 }
  0x8a   : > { %514 = vmatmul.msk.f32.vlgmr.msra.gmra.mxu2 %vm159_vm0, %v224_v6 }
  0x8f   : > { %v183_v3 = vpop.f32.mrf.mxu0 }
  0x90   : > { %v186_v4 = vsel %vm159_vm0, %v183_v3, -inf }
  0x91   : > { %187 = vmax.xlane.f32.xlu0 %v186_v4  ;;  %v289_v19 = vpop.permute.xlu1 %288 }
 0x104   : > { %v188_v7 = vpop.xlane.xlu0 %187 }
 0x105   : > { %v189_v8 = vsub.f32 %v183_v3, %v188_v7 }
 0x107   : > { %v190_v9 = vmul.f32 1.442695, %v189_v8 }
 0x109   : > { %542 = vpow2.f32 %v190_v9 }
 0x10d   : > { %v248_v14 = vpop.f32.mrf.mxu2 }
 0x10e   : > { %v251_v15 = vsel %vm159_vm0, %v248_v14, -inf }
 0x10f   : > { %v543_v10 = vpop.eup %542  ;;  %252 = vmax.xlane.f32.xlu1 %v251_v15 }
 0x110   : > { %v192_v11 = vsel %vm159_vm0, %v543_v10, 0.0 }
 0x111   : > { %193 = vadd.xlane.f32.xlu0 %v192_v11 }
 0x125   : > { %355 = vrot.lane.b32.xlu0 %v609_v0, %s569_s21 }
 0x182   : > { %v253_v22 = vpop.xlane.xlu1 %252 }
 0x183   : > { %v254_v23 = vsub.f32 %v248_v14, %v253_v22 }
 0x184   : > { %v194_v16 = vpop.xlane.xlu0 %193 }
 0x185   : > { %544 = vrcp.f32 %v194_v16  ;;  %v255_v25 = vmul.f32 1.442695, %v254_v23 }
 0x187   : > { %546 = vpow2.f32 %v255_v25 }
 0x18b   : > { %v545_v17 = vpop.eup %544 }
 0x18c   : > { %v196_v18 = vmul.f32 %v545_v17, %v543_v10 }
 0x18d   : > { %v547_v28 = vpop.eup %546 }
 0x18e   : > { %512 = vmatmul.msk.f32.vlgmr.msra.gmra.mxu1 %vm159_vm0, %v196_v18  ;;  %v257_v31 = vsel %vm159_vm0, %v547_v28, 0.0 }
 0x196   : > { %517 = vmatmul.msk.f32.vlgmr.msrb.gmra.mxu1 %vm159_vm0, %v289_v19 }
 0x197   : > { %v356_v20 = vpop.permute.xlu0 %355 }
 0x198   : > { %519 = vmatpush.xpose.msk.msrb.mxu0 %vm159_vm0, %v356_v20 }
 0x19b   : > { %520 = vmatmul.msk.f32.vlgmr.msrb.gmra.mxu0 %vm159_vm0, %v354_v21 }
 0x20b   : > { %v628_v24 = vpop.f32.mrf.mxu1 }
 0x213   : > { %v313_v26 = vpop.f32.mrf.mxu1 }
 0x214   : > { %v316_v27 = vsel %vm159_vm0, %v313_v26, -inf }
 0x215   : > { %317 = vmax.xlane.f32.xlu2 %v316_v27 }
 0x218   : > { %v378_v29 = vpop.f32.mrf.mxu0 }
 0x219   : > { %v381_v30 = vsel %vm159_vm0, %v378_v29, -inf }
 0x21a   : > { %382 = vmax.xlane.f32.xlu0 %v381_v30 }
 0x21d   : > { %258 = vadd.xlane.f32.xlu2 %v257_v31 }
 0x22e   : > { %327 = vrot.lane.b32.xlu0 %v609_v0, %s570_s22 }
 0x235   : > { %262 = vrot.lane.b32.xlu2 %v609_v0, %s571_s23 }
 0x288   : > { %v318_v32 = vpop.xlane.xlu2 %317 }
 0x289   : > { %v319_v35 = vsub.f32 %v313_v26, %v318_v32 }
 0x28b   : > { %v320_v38 = vmul.f32 1.442695, %v319_v35 }
 0x28d   : > { %v383_v33 = vpop.xlane.xlu0 %382 }
 0x28e   : > { %v384_v34 = vsub.f32 %v378_v29, %v383_v33 }
 0x290   : > { %v385_v36 = vmul.f32 1.442695, %v384_v34  ;;  %v259_v37 = vpop.xlane.xlu2 %258 }
 0x291   : > { %548 = vrcp.f32 %v259_v37 }
 0x292   : > { %550 = vpow2.f32 %v385_v36 }
 0x293   : > { %552 = vpow2.f32 %v320_v38 }
 0x297   : > { %v549_v39 = vpop.eup %548 }
 0x298   : > { %v551_v40 = vpop.eup %550  ;;  %v263_v41 = vpop.permute.xlu2 %262  ;;  %v261_v42 = vmul.f32 %v549_v39, %v547_v28 }
 0x299   : > { %283 = vmatpush.msra.mxu3 %v263_v41  ;;  %v387_v43 = vsel %vm159_vm0, %v551_v40, 0.0  ;;  %v553_v44 = vpop.eup %552 }
 0x29a   : > { %515 = vmatmul.msk.f32.vlgmr.msra.gmra.mxu3 %vm159_vm0, %v261_v42  ;;  %388 = vadd.xlane.f32.xlu1 %v387_v43  ;;  %v322_v45 = vsel %vm159_vm0, %v553_v44, 0.0 }
 0x2a0   : > { %v328_v46 = vpop.permute.xlu0 %327 }
 0x2a1   : > { %348 = vmatpush.msrb.mxu3 %v328_v46 }
 0x2a2   : > { %323 = vadd.xlane.f32.xlu1 %v322_v45 }
 0x2bb   : > { %392 = vrot.lane.b32.xlu1 %v609_v0, %s572_s24 }
 0x30d   : > { %v389_v47 = vpop.xlane.xlu1 %388 }
 0x315   : > { %v324_v48 = vpop.xlane.xlu1 %323 }
 0x316   : > { %554 = vrcp.f32 %v324_v48 }
 0x317   : > { %556 = vrcp.f32 %v389_v47 }
 0x31c   : > { %v555_v49 = vpop.eup %554 }
 0x31d   : > { %v285_v50 = vpop.f32.mrf.mxu3  ;;  %v326_v51 = vmul.f32 %v555_v49, %v553_v44  ;;  %v557_v52 = vpop.eup %556 }
 0x31e   : > { %419 = vrot.lane.b32.xlu2 %v285_v50, %s573_s25  ;;  %v391_v54 = vmul.f32 %v557_v52, %v551_v40 }
 0x31f   : > { %518 = vmatmul.msk.f32.vlgmr.msrb.gmra.mxu3 %vm159_vm0, %v326_v51 }
 0x32d   : > { %v393_v53 = vpop.permute.xlu1 %392 }
 0x32e   : > { %413 = vmatpush.msrb.mxu2 %v393_v53 }
 0x32f   : > { %521 = vmatmul.msk.f32.vlgmr.msrb.gmra.mxu2 %vm159_vm0, %v391_v54 }
 0x378   : > { %v420_v57 = vpop.permute.xlu2 %419 }
 0x379   : > { %v430_v58 = vsel %vm159_vm0, %v628_v24, %v420_v57 }
 0x3a2   : > { %v350_v55 = vpop.f32.mrf.mxu3 }
 0x3a3   : > { %423 = vrot.lane.b32.xlu0 %v350_v55, %s574_s26 }
 0x3b2   : > { %v415_v56 = vpop.f32.mrf.mxu2 }
 0x3b3   : > { %427 = vrot.lane.b32.xlu2 %v415_v56, %s575_s27 }
 0x40d   : > { %v428_v60 = vpop.permute.xlu2 %427 }
 0x415   : > { %v424_v59 = vpop.permute.xlu0 %423 }
 0x416   : > { %v432_v61 = vsel %vm431_vm1, %v430_v58, %v424_v59 }
 0x417   : > { %v434_v62 = vsel %vm433_vm2, %v432_v61, %v428_v60 }
 0x418   : > { %436 = vst.msk [vmem:[%s155_s30] sm:$0xff] %vm435_vm3, %v434_v62 }
 0x419 PF: > { %s12_s9 = sadd.s32 1, %s564_s9  }
 0x41a   : > { %p9_p4 = scmp.ge.s32.totalorder %s12_s9, 4  }
 0x41c   :  { %11 = sbr.rel (!%p9_p4) target bundleno = 1 (0x1), region = 61 }

// kernel: _lambda_.16
= control target key start
LH: loop header
LB: loop body
LE: loop exit
PB: predicated region body
PF: predicated region fallthrough
CT: control target
= control target key end

     0   :  { %vm18_vm0 = vcmask 523264   ;;  %v183_v2 = vmov 0.0   ;;  %vm29_vm1 = vcmask 261120   ;;  %s255_s1 = inlined_call_operand.vmem [shape: f32[32,64], index: 1, kind: input, shape index: {}]   ;;  %s256_s2 = inlined_call_operand.vmem [shape: f32[1,64], index: 2, kind: input, shape index: {}]   ;;  %s257_s0 = inlined_call_operand.vmem [shape: f32[16,32], index: 0, kind: input, shape index: {}]   ;;  %s258_s3 = inlined_call_operand.vmem [shape: f32[16,64], index: 3, kind: output, shape index: {}]  }
   0x1   :  { %v28_v0 = vld [vmem:[%s255_s1 + $0x18] sm:$0xff]  ;;  %v27_v1 = vld [vmem:[%s255_s1 + $0x10] sm:$0xff]  ;;  %19 = vst.msk [vmem:[#allocation2] sm:$0xff] %vm18_vm0, %v183_v2  ;;  %v26_v3 = vld [vmem:[%s255_s1 + $0x8] sm:$0xff] }
   0x2   :  { %48 = vmatpush.msra.mxu0 %v28_v0  ;;  %173 = vmatpush.msra.mxu1 %v28_v0  ;;  %20 = vst.msk [vmem:[#allocation2 + $0x8] sm:$0xff] %vm18_vm0, %v183_v2  ;;  %v25_v4 = vld [vmem:[%s255_s1] sm:$0xff]  ;;  %v24_v6 = vld [vmem:[%s257_s0 + $0x8] sm:$0xff] }
   0x3   :  { %v23_v5 = vld [vmem:[%s257_s0] sm:$0xff] }
   0x4   :  { %49 = vmatpush.msra.mxu0 %v27_v1  ;;  %174 = vmatpush.msra.mxu1 %v27_v1  ;;  %v178_v13 = vld [vmem:[%s256_s2] ss:$0 sm:$0xff] }
   0x6   :  { %50 = vmatpush.msra.mxu0 %v26_v3  ;;  %175 = vmatpush.msra.mxu1 %v26_v3 }
   0x8   :  { %51 = vmatpush.msra.mxu0 %v25_v4  ;;  %176 = vmatpush.msra.mxu1 %v25_v4  ;;  %v21_v7 = vld [vmem:[#allocation2] sm:$0xff] }
   0x9   :  { %169 = vmatmul.msk.f32.vlgmr.msra.gmra.mxu0 %vm29_vm1, %v23_v5  ;;  %170 = vmatmul.msk.f32.vlgmr.msra.gmra.mxu1 %vm29_vm1, %v24_v6  ;;  %v22_v8 = vld [vmem:[#allocation2 + $0x8] sm:$0xff] }
  0x86   :  { %v53_v9 = vpop.f32.mrf.mxu0  ;;  %v56_v10 = vpop.f32.mrf.mxu1 }
  0x87   :  { %v59_v11 = vadd.f32 %v53_v9, %v21_v7  ;;  %v60_v12 = vadd.f32 %v56_v10, %v22_v8 }
  0x89   :  { %62 = vst.msk [vmem:[#allocation2] sm:$0xff] %vm18_vm0, %v59_v11 }
  0x8a   :  { %63 = vst.msk [vmem:[#allocation2 + $0x8] sm:$0xff] %vm18_vm0, %v60_v12 }
  0x90   :  { %v67_v14 = vld [vmem:[#allocation2] sm:$0xff] }
  0x91   :  { %v229_v15 = vadd.f32 %v178_v13, %v67_v14  ;;  %v68_v16 = vld [vmem:[#allocation2 + $0x8] sm:$0xff] }
  0x92   :  { %v231_v17 = vadd.f32 %v178_v13, %v68_v16 }
  0x93   :  { %v234_v18 = vmul.f32 0.70710677, %v229_v15 }
  0x94   :  { %v237_v19 = vmul.f32 0.70710677, %v231_v17 }
  0x95   :  { %v79_v20 = vmul.f32 %v234_v18, %v234_v18 }
  0x96   :  { %v119_v21 = vmul.f32 %v237_v19, %v237_v19 }
  0x97   :  { %v80_v22 = vmin.f32 %v79_v20, 16.0 }
  0x98   :  { %v120_v23 = vmin.f32 %v119_v21, 16.0 }
  0x99   :  { %v81_v24 = vmul.f32 2.1237322e-06, %v80_v22  ;;  %v92_v25 = vmul.f32 3.8918573e-05, %v80_v22 }
  0x9a   :  { %v121_v26 = vmul.f32 2.1237322e-06, %v120_v23  ;;  %v132_v27 = vmul.f32 3.8918573e-05, %v120_v23 }
  0x9b   :  { %v82_v28 = vadd.f32 0.00028619796, %v81_v24  ;;  %v93_v29 = vadd.f32 0.001143296, %v92_v25 }
  0x9c   :  { %v122_v30 = vadd.f32 0.00028619796, %v121_v26  ;;  %v133_v31 = vadd.f32 0.001143296, %v132_v27 }
  0x9d   :  { %v83_v32 = vmul.f32 %v82_v28, %v80_v22  ;;  %v94_v33 = vmul.f32 %v93_v29, %v80_v22 }
  0x9e   :  { %v123_v34 = vmul.f32 %v122_v30, %v120_v23  ;;  %v134_v35 = vmul.f32 %v133_v31, %v120_v23  ;;  %v75_v30 = vmul.f32 0.5, %v229_v15 }
  0x9f   :  { %v84_v36 = vadd.f32 0.0036580483, %v83_v32  ;;  %v95_v37 = vadd.f32 0.014752088, %v94_v33  ;;  %v76_v32 = vmul.f32 0.5, %v231_v17 }
  0xa0   :  { %v135_v38 = vadd.f32 0.014752088, %v134_v35  ;;  %v124_v40 = vadd.f32 0.0036580483, %v123_v34 }
  0xa1   :  { %v96_v39 = vmul.f32 %v95_v37, %v80_v22  ;;  %v85_v42 = vmul.f32 %v84_v36, %v80_v22 }
  0xa2   :  { %v136_v41 = vmul.f32 %v135_v38, %v120_v23  ;;  %v125_v46 = vmul.f32 %v124_v40, %v120_v23 }
  0xa3   :  { %v97_v43 = vadd.f32 0.112945676, %v96_v39  ;;  %v86_v48 = vadd.f32 0.05243302, %v85_v42 }
  0xa4   :  { %v137_v44 = vadd.f32 0.112945676, %v136_v41  ;;  %v126_v52 = vadd.f32 0.05243302, %v125_v46 }
  0xa5   :  { %v98_v45 = vmul.f32 %v97_v43, %v80_v22  ;;  %v87_v54 = vmul.f32 %v86_v48, %v80_v22 }
  0xa6   :  { %v138_v47 = vmul.f32 %v137_v44, %v120_v23  ;;  %v127_v57 = vmul.f32 %v126_v52, %v120_v23 }
  0xa7   :  { %v99_v49 = vadd.f32 0.4994258, %v98_v45  ;;  %v88_v58 = vadd.f32 0.18741608, %v87_v54 }
  0xa8   :  { %v139_v50 = vadd.f32 0.4994258, %v138_v47  ;;  %v128_v59 = vadd.f32 0.18741608, %v127_v57 }
  0xa9   :  { %v100_v51 = vmul.f32 %v99_v49, %v80_v22  ;;  %v89_v61 = vmul.f32 %v88_v58, %v80_v22 }
  0xaa   :  { %v140_v53 = vmul.f32 %v139_v50, %v120_v23  ;;  %v129_v0 = vmul.f32 %v128_v59, %v120_v23 }
  0xab   :  { %v101_v55 = vadd.f32 1.0, %v100_v51  ;;  %v90_v3 = vadd.f32 1.1283791, %v89_v61 }
  0xac   :  { %v141_v56 = vadd.f32 1.0, %v140_v53  ;;  %v130_v9 = vadd.f32 1.1283791, %v129_v0 }
  0xad   :  { %179 = vrcp.f32 %v101_v55  ;;  %v113_v4 = vand.u32 2147483648, %v101_v55  ;;  %v111_v7 = vand.u32 2147483647, %v101_v55  ;;  %vm107_vm4 = vweird.f32 %v101_v55 }
  0xae   :  { %181 = vrcp.f32 %v141_v56  ;;  %v153_v8 = vand.u32 2147483648, %v141_v56  ;;  %v151_v11 = vand.u32 2147483647, %v141_v56  ;;  %vm147_vm6 = vweird.f32 %v141_v56 }
  0xaf   :  { %v114_v13 = vor.u32 1.1754944e-38, %v113_v4  ;;  %v91_v16 = vmul.f32 %v90_v3, %v234_v18  ;;  %vm112_vm7 = vcmp.eq.f32.partialorder %v111_v7, 8.507059e+37  ;;  %v131_v23 = vmul.f32 %v130_v9, %v237_v19 }
  0xb0   :  { %v154_v21 = vor.u32 1.1754944e-38, %v153_v8  ;;  %vm152_vm9 = vcmp.eq.f32.partialorder %v151_v11, 8.507059e+37 }
  0xb3   :  { %v180_v60 = vpop.eup %179 }
  0xb4   :  { %v182_v62 = vpop.eup %181  ;;  %v103_v63 = vmul.f32 %v180_v60, %v101_v55  ;;  %vm108_vm2 = vweird.f32 %v180_v60 }
  0xb5   :  { %v143_v1 = vmul.f32 %v182_v62, %v141_v56  ;;  %vm148_vm3 = vweird.f32 %v182_v62  ;;  %vm109_vm5 = vmor %vm107_vm4, %vm108_vm2 }
  0xb6   :  { %v104_v2 = vsub.f32 1.0, %v103_v63  ;;  %vm149_vm8 = vmor %vm147_vm6, %vm148_vm3 }
  0xb7   :  { %v144_v5 = vsub.f32 1.0, %v143_v1 }
  0xb8   :  { %v105_v6 = vmul.f32 %v180_v60, %v104_v2 }
  0xb9   :  { %v145_v10 = vmul.f32 %v182_v62, %v144_v5 }
  0xba   :  { %v106_v12 = vadd.f32 %v180_v60, %v105_v6 }
  0xbb   :  { %v146_v14 = vadd.f32 %v182_v62, %v145_v10 }
  0xbc   :  { %v110_v20 = vsel %vm109_vm5, %v180_v60, %v106_v12 }
  0xbd   :  { %v115_v22 = vsel %vm112_vm7, %v114_v13, %v110_v20  ;;  %v150_v24 = vsel %vm149_vm8, %v182_v62, %v146_v14 }
  0xbe   :  { %v116_v25 = vmul.f32 %v115_v22, %v91_v16  ;;  %v155_v26 = vsel %vm152_vm9, %v154_v21, %v150_v24 }
  0xbf   :  { %v156_v27 = vmul.f32 %v155_v26, %v131_v23 }
  0xc0   :  { %v171_v28 = vclamps-f32 %v116_v25, 1.0 }
  0xc1   :  { %v172_v29 = vclamps-f32 %v156_v27, 1.0 }
  0xc2   :  { %v159_v31 = vadd.f32 1.0, %v171_v28 }
  0xc3   :  { %v160_v18 = vadd.f32 1.0, %v172_v29 }
  0xc4   :  { %v161_v33 = vmul.f32 %v159_v31, %v75_v30 }
  0xc5   :  { %v162_v34 = vmul.f32 %v160_v18, %v76_v32 }
  0xc6   :  { %163 = vst.msk [vmem:[%s258_s3] sm:$0xff] %vm18_vm0, %v161_v33 }
  0xc7   :  { %164 = vst.msk [vmem:[%s258_s3 + $0x8] sm:$0xff] %vm18_vm0, %v162_v34 }

// kernel: _lambda_.15
= control target key start
LH: loop header
LB: loop body
LE: loop exit
PB: predicated region body
PF: predicated region fallthrough
CT: control target
= control target key end

     0   :  { %vm27_vm0 = vcmask 261120   ;;  %v173_v2 = vmov 0.0   ;;  %v174_v24 = vmov 32.0   ;;  %s261_s1 = inlined_call_operand.vmem [shape: f32[32,32], index: 1, kind: input, shape index: {}]   ;;  %s262_s0 = inlined_call_operand.vmem [shape: f32[16,32], index: 0, kind: input, shape index: {}]   ;;  %s263_s2 = inlined_call_operand.vmem [shape: f32[1,32], index: 2, kind: input, shape index: {}]   ;;  %s264_s3 = inlined_call_operand.vmem [shape: f32[16,32], index: 3, kind: input, shape index: {}]   ;;  %s265_s4 = inlined_call_operand.vmem [shape: f32[1,32], index: 4, kind: input, shape index: {}]   ;;  %s266_s5 = inlined_call_operand.vmem [shape: f32[1,32], index: 5, kind: input, shape index: {}]   ;;  %s267_s6 = inlined_call_operand.vmem [shape: f32[16,32], index: 6, kind: output, shape index: {}]  }
   0x1   :  { %v37_v0 = vld [vmem:[%s261_s1 + $0x18] sm:$0xff]  ;;  %v36_v1 = vld [vmem:[%s261_s1 + $0x10] sm:$0xff]  ;;  %28 = vst.msk [vmem:[#allocation2] sm:$0xff] %vm27_vm0, %v173_v2  ;;  %v35_v3 = vld [vmem:[%s261_s1 + $0x8] sm:$0xff]  ;;  %167 = vrcp.f32 %v174_v24 }
   0x2   :  { %57 = vmatpush.msra.mxu0 %v37_v0  ;;  %158 = vmatpush.msra.mxu1 %v37_v0  ;;  %29 = vst.msk [vmem:[#allocation2 + $0x8] sm:$0xff] %vm27_vm0, %v173_v2  ;;  %v34_v4 = vld [vmem:[%s261_s1] sm:$0xff]  ;;  %v33_v6 = vld [vmem:[%s262_s0 + $0x8] sm:$0xff] }
   0x3   :  { %v32_v5 = vld [vmem:[%s262_s0] sm:$0xff]  ;;  %v84_v20 = vld [vmem:[%s264_s3 + $0x8] sm:$0xff] }
   0x4   :  { %58 = vmatpush.msra.mxu0 %v36_v1  ;;  %159 = vmatpush.msra.mxu1 %v36_v1  ;;  %v164_v13 = vld [vmem:[%s263_s2] ss:$0 sm:$0xff] }
   0x5   :  { %v83_v15 = vld [vmem:[%s264_s3] sm:$0xff] }
   0x6   :  { %59 = vmatpush.msra.mxu0 %v35_v3  ;;  %160 = vmatpush.msra.mxu1 %v35_v3  ;;  %v165_v55 = vld [vmem:[%s265_s4] ss:$0 sm:$0xff] }
   0x7   :  { %v168_v25 = vpop.eup %167  ;;  %v166_v58 = vld [vmem:[%s266_s5] ss:$0 sm:$0xff] }
   0x8   :  { %60 = vmatpush.msra.mxu0 %v34_v4  ;;  %161 = vmatpush.msra.mxu1 %v34_v4  ;;  %v30_v7 = vld [vmem:[#allocation2] sm:$0xff]  ;;  %v94_v26 = vmul.f32 32.0, %v168_v25  ;;  %vm98_vm1 = vweird.f32 %v168_v25 }
   0x9   :  { %156 = vmatmul.msk.f32.vlgmr.msra.gmra.mxu0 %vm27_vm0, %v32_v5  ;;  %157 = vmatmul.msk.f32.vlgmr.msra.gmra.mxu1 %vm27_vm0, %v33_v6  ;;  %v31_v8 = vld [vmem:[#allocation2 + $0x8] sm:$0xff] }
   0xa   :  { %v95_v27 = vsub.f32 1.0, %v94_v26 }
   0xc   :  { %v96_v28 = vmul.f32 %v168_v25, %v95_v27 }
   0xe   :  { %v97_v29 = vadd.f32 %v168_v25, %v96_v28 }
  0x10   :  { %v99_v30 = vsel %vm98_vm1, %v168_v25, %v97_v29 }
  0x86   :  { %v62_v9 = vpop.f32.mrf.mxu0  ;;  %v65_v10 = vpop.f32.mrf.mxu1 }
  0x87   :  { %v68_v11 = vadd.f32 %v62_v9, %v30_v7  ;;  %v69_v12 = vadd.f32 %v65_v10, %v31_v8 }
  0x89   :  { %70 = vst.msk [vmem:[#allocation2] sm:$0xff] %vm27_vm0, %v68_v11 }
  0x8a   :  { %71 = vst.msk [vmem:[#allocation2 + $0x8] sm:$0xff] %vm27_vm0, %v69_v12 }
  0x90   :  { %v75_v14 = vld [vmem:[#allocation2] sm:$0xff] }
  0x91   :  { %v81_v16 = vadd.f32 %v164_v13, %v75_v14  ;;  %v76_v17 = vld [vmem:[#allocation2 + $0x8] sm:$0xff] }
  0x92   :  { %v82_v19 = vadd.f32 %v164_v13, %v76_v17 }
  0x93   :  { %v85_v18 = vadd.f32 %v83_v15, %v81_v16 }
  0x94   :  { %v86_v22 = vadd.f32 %v84_v20, %v82_v19 }
  0x95   :  { %v87_v21 = vsel %vm27_vm0, %v85_v18, 0.0 }
  0x96   :  { %88 = vadd.xlane.f32.xlu0 %v87_v21  ;;  %v90_v23 = vsel %vm27_vm0, %v86_v22, 0.0 }
  0x9e   :  { %91 = vadd.xlane.f32.xlu0 %v90_v23 }
 0x109   :  { %v89_v31 = vpop.xlane.xlu0 %88 }
 0x10a   :  { %v100_v32 = vmul.f32 %v99_v30, %v89_v31 }
 0x10c   :  { %v102_v33 = vsub.f32 %v85_v18, %v100_v32 }
 0x10e   :  { %v104_v34 = vmul.f32 %v102_v33, %v102_v33 }
 0x110   :  { %v106_v35 = vsel %vm27_vm0, %v104_v34, 0.0 }
 0x111   :  { %107 = vadd.xlane.f32.xlu1 %v106_v35  ;;  %v92_v36 = vpop.xlane.xlu0 %91 }
 0x112   :  { %v101_v37 = vmul.f32 %v99_v30, %v92_v36 }
 0x114   :  { %v103_v38 = vsub.f32 %v86_v22, %v101_v37 }
 0x116   :  { %v105_v39 = vmul.f32 %v103_v38, %v103_v38 }
 0x118   :  { %v109_v40 = vsel %vm27_vm0, %v105_v39, 0.0 }
 0x119   :  { %110 = vadd.xlane.f32.xlu1 %v109_v40 }
 0x184   :  { %v108_v41 = vpop.xlane.xlu1 %107 }
 0x185   :  { %v112_v42 = vmul.f32 %v108_v41, %v99_v30 }
 0x187   :  { %v114_v43 = vadd.f32 1e-12, %v112_v42 }
 0x189   :  { %169 = vrsqrt.f32 %v114_v43  ;;  %vm122_vm3 = vweird.f32 %v114_v43 }
 0x18c   :  { %v111_v44 = vpop.xlane.xlu1 %110 }
 0x18d   :  { %v113_v45 = vmul.f32 %v111_v44, %v99_v30 }
 0x18f   :  { %v170_v46 = vpop.eup %169  ;;  %v115_v47 = vadd.f32 1e-12, %v113_v45 }
 0x190   :  { %v117_v48 = vmul.f32 %v170_v46, %v114_v43  ;;  %vm123_vm2 = vweird.f32 %v170_v46 }
 0x191   :  { %171 = vrsqrt.f32 %v115_v47  ;;  %vm124_vm4 = vmor %vm122_vm3, %vm123_vm2  ;;  %vm132_vm6 = vweird.f32 %v115_v47 }
 0x192   :  { %v118_v49 = vmul.f32 %v170_v46, %v117_v48 }
 0x194   :  { %v119_v50 = vmul.f32 0.5, %v118_v49 }
 0x196   :  { %v120_v51 = vsub.f32 1.5, %v119_v50 }
 0x197   :  { %v172_v52 = vpop.eup %171 }
 0x198   :  { %v121_v53 = vmul.f32 %v170_v46, %v120_v51  ;;  %v127_v54 = vmul.f32 %v172_v52, %v115_v47  ;;  %vm133_vm5 = vweird.f32 %v172_v52 }
 0x199   :  { %vm134_vm7 = vmor %vm132_vm6, %vm133_vm5 }
 0x19a   :  { %v125_v56 = vsel %vm124_vm4, %v170_v46, %v121_v53  ;;  %v128_v57 = vmul.f32 %v172_v52, %v127_v54 }
 0x19b   :  { %v136_v59 = vmul.f32 %v125_v56, %v102_v33 }
 0x19c   :  { %v129_v60 = vmul.f32 0.5, %v128_v57 }
 0x19d   :  { %v142_v61 = vmul.f32 %v165_v55, %v136_v59 }
 0x19e   :  { %v130_v62 = vsub.f32 1.5, %v129_v60 }
 0x19f   :  { %v148_v63 = vadd.f32 %v166_v58, %v142_v61 }
 0x1a0   :  { %v131_v0 = vmul.f32 %v172_v52, %v130_v62 }
 0x1a1   :  { %150 = vst.msk [vmem:[%s267_s6] sm:$0xff] %vm27_vm0, %v148_v63 }
 0x1a2   :  { %v135_v1 = vsel %vm134_vm7, %v172_v52, %v131_v0 }
 0x1a3   :  { %v137_v2 = vmul.f32 %v135_v1, %v103_v38 }
 0x1a5   :  { %v143_v3 = vmul.f32 %v165_v55, %v137_v2 }
 0x1a7   :  { %v149_v4 = vadd.f32 %v166_v58, %v143_v3 }
 0x1a9   :  { %151 = vst.msk [vmem:[%s267_s6 + $0x8] sm:$0xff] %vm27_vm0, %v149_v4 }

// kernel: _lambda_.17
= control target key start
LH: loop header
LB: loop body
LE: loop exit
PB: predicated region body
PF: predicated region fallthrough
CT: control target
= control target key end

     0   :  { %vm28_vm0 = vcmask 261120   ;;  %v226_v2 = vmov 0.0   ;;  %s324_s0 = inlined_call_operand.vmem [shape: f32[16,64], index: 0, kind: input, shape index: {}]   ;;  %s325_s1 = inlined_call_operand.vmem [shape: f32[64,32], index: 1, kind: input, shape index: {}]   ;;  %s326_s2 = inlined_call_operand.vmem [shape: f32[1,32], index: 2, kind: input, shape index: {}]   ;;  %s327_s3 = inlined_call_operand.vmem [shape: f32[16,32], index: 3, kind: input, shape index: {}]   ;;  %s328_s4 = inlined_call_operand.vmem [shape: f32[1,32], index: 4, kind: input, shape index: {}]   ;;  %s329_s5 = inlined_call_operand.vmem [shape: f32[1,32], index: 5, kind: input, shape index: {}]   ;;  %s330_s6 = inlined_call_operand.hbm [shape: f32[16,32], index: 6, kind: output, shape index: {}]  }
   0x1   :  { %v42_v0 = vld [vmem:[%s325_s1 + $0x38] sm:$0xff]  ;;  %v41_v1 = vld [vmem:[%s325_s1 + $0x30] sm:$0xff]  ;;  %29 = vst.msk [vmem:[#allocation2] sm:$0xff] %vm28_vm0, %v226_v2  ;;  %v40_v3 = vld [vmem:[%s325_s1 + $0x28] sm:$0xff] }
   0x2   :  { %58 = vmatpush.msra.mxu0 %v42_v0  ;;  %178 = vmatpush.msra.mxu1 %v42_v0  ;;  %30 = vst.msk [vmem:[#allocation2 + $0x8] sm:$0xff] %vm28_vm0, %v226_v2  ;;  %v39_v4 = vld [vmem:[%s325_s1 + $0x20] sm:$0xff] }
   0x4   :  { %59 = vmatpush.msra.mxu0 %v41_v1  ;;  %179 = vmatpush.msra.mxu1 %v41_v1 }
   0x5   :  { %11 = vsyncpa [#allocation4], 0  ;;  %v38_v5 = vld [vmem:[%s325_s1 + $0x18] sm:$0xff]  ;;  %v37_v6 = vld [vmem:[%s325_s1 + $0x10] sm:$0xff]  ;;  %vm43_vm1 = vcmask 523264   ;;  %v227_v28 = vmov 32.0  }
   0x6   :  { %60 = vmatpush.msra.mxu0 %v40_v3  ;;  %180 = vmatpush.msra.mxu1 %v40_v3  ;;  %v36_v7 = vld [vmem:[%s325_s1 + $0x8] sm:$0xff]  ;;  %v35_v8 = vld [vmem:[%s325_s1] sm:$0xff]  ;;  %194 = vrcp.f32 %v227_v28  ;;  %s164_s26 = sshll.u32 %s330_s6, 4  ;;  %s230_s27 = smov 8   ;;  %s165_s26 = int_to_ptr.hbm [resolvable:$true] %s164_s26 }
   0x7   :  { %v33_v9 = vld [vmem:[%s324_s0] sm:$0xff]  ;;  %v34_v10 = vld [vmem:[%s324_s0 + $0x8] sm:$0xff] }
   0x8   :  { %61 = vmatpush.msra.mxu0 %v39_v4  ;;  %181 = vmatpush.msra.mxu1 %v39_v4  ;;  %v31_v11 = vld [vmem:[#allocation2] sm:$0xff]  ;;  %v90_v24 = vld [vmem:[%s327_s3 + $0x8] sm:$0xff] }
   0x9   :  { %v32_v12 = vld [vmem:[#allocation2 + $0x8] sm:$0xff]  ;;  %v191_v17 = vld [vmem:[%s326_s2] ss:$0 sm:$0xff] }
   0xa   :  { %62 = vmatpush.msra.mxu0 %v38_v5  ;;  %182 = vmatpush.msra.mxu1 %v38_v5  ;;  %v89_v19 = vld [vmem:[%s327_s3] sm:$0xff] }
   0xb   :  { %v192_v59 = vld [vmem:[%s328_s4] ss:$0 sm:$0xff]  ;;  %s228_s4 = smov [#allocation3]  }
   0xc   :  { %63 = vmatpush.msra.mxu0 %v37_v6  ;;  %183 = vmatpush.msra.mxu1 %v37_v6  ;;  %v195_v29 = vpop.eup %194  ;;  %v193_v63 = vld [vmem:[%s329_s5] ss:$0 sm:$0xff]  ;;  %s162_s23 = sshll.u32 %s228_s4, 4  ;;  %s229_s5 = smov 128   ;;  %s163_s23 = int_to_ptr.vmem [resolvable:$true] %s162_s23 }
   0xd   :  { %v100_v30 = vmul.f32 32.0, %v195_v29  ;;  %vm104_vm2 = vweird.f32 %v195_v29 }
   0xe   :  { %64 = vmatpush.msra.mxu0 %v36_v7  ;;  %184 = vmatpush.msra.mxu1 %v36_v7 }
   0xf   :  { %v101_v31 = vsub.f32 1.0, %v100_v30 }
  0x10   :  { %65 = vmatpush.msra.mxu0 %v35_v8  ;;  %185 = vmatpush.msra.mxu1 %v35_v8 }
  0x11   :  { %176 = vmatmul.msk.f32.vlgmr.msra.gmra.mxu0 %vm43_vm1, %v33_v9  ;;  %177 = vmatmul.msk.f32.vlgmr.msra.gmra.mxu1 %vm43_vm1, %v34_v10  ;;  %v102_v32 = vmul.f32 %v195_v29, %v101_v31 }
  0x13   :  { %v103_v33 = vadd.f32 %v195_v29, %v102_v32 }
  0x15   :  { %v105_v34 = vsel %vm104_vm2, %v195_v29, %v103_v33 }
  0x8e   :  { %v67_v13 = vpop.f32.mrf.mxu0  ;;  %v70_v14 = vpop.f32.mrf.mxu1 }
  0x8f   :  { %v73_v15 = vadd.f32 %v67_v13, %v31_v11  ;;  %v74_v16 = vadd.f32 %v70_v14, %v32_v12 }
  0x91   :  { %76 = vst.msk [vmem:[#allocation2] sm:$0xff] %vm28_vm0, %v73_v15 }
  0x92   :  { %77 = vst.msk [vmem:[#allocation2 + $0x8] sm:$0xff] %vm28_vm0, %v74_v16 }
  0x98   :  { %v81_v18 = vld [vmem:[#allocation2] sm:$0xff] }
  0x99   :  { %v87_v20 = vadd.f32 %v191_v17, %v81_v18  ;;  %v82_v21 = vld [vmem:[#allocation2 + $0x8] sm:$0xff] }
  0x9a   :  { %v88_v23 = vadd.f32 %v191_v17, %v82_v21 }
  0x9b   :  { %v91_v22 = vadd.f32 %v89_v19, %v87_v20 }
  0x9c   :  { %v92_v26 = vadd.f32 %v90_v24, %v88_v23 }
  0x9d   :  { %v93_v25 = vsel %vm28_vm0, %v91_v22, 0.0 }
  0x9e   :  { %94 = vadd.xlane.f32.xlu0 %v93_v25  ;;  %v96_v27 = vsel %vm28_vm0, %v92_v26, 0.0 }
  0xa6   :  { %97 = vadd.xlane.f32.xlu0 %v96_v27 }
 0x111   :  { %v95_v35 = vpop.xlane.xlu0 %94 }
 0x112   :  { %v106_v36 = vmul.f32 %v105_v34, %v95_v35 }
 0x114   :  { %v108_v37 = vsub.f32 %v91_v22, %v106_v36 }
 0x116   :  { %v110_v38 = vmul.f32 %v108_v37, %v108_v37 }
 0x118   :  { %v112_v39 = vsel %vm28_vm0, %v110_v38, 0.0 }
 0x119   :  { %113 = vadd.xlane.f32.xlu1 %v112_v39  ;;  %v98_v40 = vpop.xlane.xlu0 %97 }
 0x11a   :  { %v107_v41 = vmul.f32 %v105_v34, %v98_v40 }
 0x11c   :  { %v109_v42 = vsub.f32 %v92_v26, %v107_v41 }
 0x11e   :  { %v111_v43 = vmul.f32 %v109_v42, %v109_v42 }
 0x120   :  { %v115_v44 = vsel %vm28_vm0, %v111_v43, 0.0 }
 0x121   :  { %116 = vadd.xlane.f32.xlu1 %v115_v44 }
 0x18c   :  { %v114_v45 = vpop.xlane.xlu1 %113 }
 0x18d   :  { %v118_v46 = vmul.f32 %v114_v45, %v105_v34 }
 0x18f   :  { %v120_v47 = vadd.f32 1e-12, %v118_v46 }
 0x191   :  { %196 = vrsqrt.f32 %v120_v47  ;;  %vm128_vm4 = vweird.f32 %v120_v47 }
 0x194   :  { %v117_v48 = vpop.xlane.xlu1 %116 }
 0x195   :  { %v119_v49 = vmul.f32 %v117_v48, %v105_v34 }
 0x197   :  { %v197_v50 = vpop.eup %196  ;;  %v121_v51 = vadd.f32 1e-12, %v119_v49 }
 0x198   :  { %v123_v52 = vmul.f32 %v197_v50, %v120_v47  ;;  %vm129_vm3 = vweird.f32 %v197_v50 }
 0x199   :  { %198 = vrsqrt.f32 %v121_v51  ;;  %vm130_vm5 = vmor %vm128_vm4, %vm129_vm3  ;;  %vm138_vm7 = vweird.f32 %v121_v51 }
 0x19a   :  { %v124_v53 = vmul.f32 %v197_v50, %v123_v52 }
 0x19c   :  { %v125_v54 = vmul.f32 0.5, %v124_v53 }
 0x19e   :  { %v126_v55 = vsub.f32 1.5, %v125_v54 }
 0x19f   :  { %v199_v56 = vpop.eup %198 }
 0x1a0   :  { %v127_v57 = vmul.f32 %v197_v50, %v126_v55  ;;  %v133_v58 = vmul.f32 %v199_v56, %v121_v51  ;;  %vm139_vm6 = vweird.f32 %v199_v56 }
 0x1a1   :  { %vm140_vm8 = vmor %vm138_vm7, %vm139_vm6 }
 0x1a2   :  { %v131_v60 = vsel %vm130_vm5, %v197_v50, %v127_v57  ;;  %v134_v61 = vmul.f32 %v199_v56, %v133_v58 }
 0x1a3   :  { %v142_v62 = vmul.f32 %v131_v60, %v108_v37 }
 0x1a4   :  { %v135_v0 = vmul.f32 0.5, %v134_v61 }
 0x1a5   :  { %v148_v1 = vmul.f32 %v192_v59, %v142_v62 }
 0x1a6   :  { %v136_v2 = vsub.f32 1.5, %v135_v0 }
 0x1a7   :  { %v154_v3 = vadd.f32 %v193_v63, %v148_v1 }
 0x1a8   :  { %v137_v4 = vmul.f32 %v199_v56, %v136_v2 }
 0x1a9   :  { %156 = vst.msk [vmem:[#allocation3] sm:$0xff] %vm28_vm0, %v154_v3 }
 0x1aa   :  { %v141_v5 = vsel %vm140_vm8, %v199_v56, %v137_v4 }
 0x1ab   :  { %v143_v6 = vmul.f32 %v141_v5, %v109_v42 }
 0x1ad   :  { %v149_v7 = vmul.f32 %v192_v59, %v143_v6 }
 0x1af   :  { %v155_v8 = vadd.f32 %v193_v63, %v149_v7 }
 0x1b1   :  { %157 = vst.msk [vmem:[#allocation3 + $0x8] sm:$0xff] %vm28_vm0, %v155_v8 }
 0x1b2   :  { %170 = dma.vmem_to_hbm [thread:$0]  %s163_s23, 256, %s165_s26, [#allocation4], %s229_s5, %s229_s5, %s230_s27  }
 0x1b3   :  { %224 = dma.done.wait [#allocation4], 256  }
 0x1b4   :  { %225 = vsyncadd [#allocation4], 4294967040 }
 0x1b5   :  { %175 = vsyncpa [#allocation4], 1 }

</bundles_post_ra>
